<compile_context>
chip_gen: v7x
topology: tpu7x:2x2x1
jax: 0.10.0
libtpu: 0.0.40
codegen_flags: <defaults>
</compile_context>

<pallas_src>
import jax
import jax.numpy as jnp
from jax.experimental import pallas as pl
from jax.experimental.pallas import tpu as pltpu


def _round_up(x, m):
    return (x + m - 1) // m * m


# ----------------------------------------------------------------------------
# Mixed (multi-transform) path kernel
# ----------------------------------------------------------------------------
def _mixed_kernel(x_ref, inv_ref,            # scalar prefetch (SMEM): (n_pad,) int32
                  etype_ref,                 # VMEM (bm, 1) int32
                  fixed_hbm, emb_hbm,        # HBM refs (pl.ANY)
                  w_ref,                     # VMEM (max_len, T*d) f32
                  out_ref,                   # VMEM (bm, d) f32
                  fixed_buf, emb_buf, sem):  # scratch: VMEM gathers + DMA sems
    bm, d = out_ref.shape
    num_lin = w_ref.shape[1] // d
    base = pl.program_id(0) * bm

    # 1) DMA-gather the needed table rows from HBM into VMEM scratch.
    @pl.loop(0, bm)
    def _issue(j):
        row = x_ref[base + j]      # node id        -> fixed_emb row
        lrow = inv_ref[base + j]   # learned index  -> emb_weight row (pre-clipped)
        pltpu.make_async_copy(fixed_hbm.at[row], fixed_buf.at[j], sem.at[0, j]).start()
        pltpu.make_async_copy(emb_hbm.at[lrow], emb_buf.at[j], sem.at[1, j]).start()

    @pl.loop(0, bm)
    def _wait(j):
        pltpu.make_async_copy(fixed_hbm.at[0], fixed_buf.at[j], sem.at[0, j]).wait()
        pltpu.make_async_copy(emb_hbm.at[0], emb_buf.at[j], sem.at[1, j]).wait()

    # 2) One fused MXU matmul against all T linear transforms at once.
    lin_all = jnp.dot(fixed_buf[...], w_ref[...],
                      preferred_element_type=jnp.float32)           # (bm, T*d)

    # 3) Integer-typed per-row select / accumulate.
    etype = etype_ref[...]                                          # (bm, 1) int32
    out = jnp.where(etype == 0, emb_buf[...], 0.0)
    for t in range(num_lin):                                        # static, small
        out = out + jnp.where(etype == t + 1,
                              lin_all[:, t * d:(t + 1) * d], 0.0)
    out_ref[...] = out


def mixed_embedding_forward(x_idx, etype_tab, inv_tab, fixed_emb, emb_weight,
                            lin_weights, *, block_m=128):
    """Mixed path.  lin_weights: (T, embedding_dim, max_len) — nn.Linear layout."""
    n = int(x_idx.shape[0])
    num_learned, d = emb_weight.shape
    num_emb, max_len = fixed_emb.shape
    num_lin = lin_weights.shape[0]

    block_m = max(8, min(block_m, _round_up(n, 8)))
    n_pad = _round_up(max(n, block_m), block_m)
    pad = n_pad - n

    x32 = x_idx.astype(jnp.int32)
    # Cheap integer gathers hoisted out of the kernel.
    etype_x = etype_tab.astype(jnp.int32)[x32]
    inv_x = jnp.clip(inv_tab.astype(jnp.int32)[x32], 0, num_learned - 1)

    x_p = jnp.pad(x32, (0, pad))
    inv_p = jnp.pad(inv_x, (0, pad))
    etype_p = jnp.pad(etype_x, (0, pad)).reshape(n_pad, 1)

    fixed_f32 = fixed_emb.astype(jnp.float32)
    emb_f32 = emb_weight.astype(jnp.float32)
    # All T linear transforms fused along the output dim: (max_len, T*d).
    w_all = jnp.transpose(lin_weights.astype(jnp.float32),
                          (2, 0, 1)).reshape(max_len, num_lin * d)

    cost = pl.CostEstimate(
        flops=int(2 * n_pad * max_len * num_lin * d),
        transcendentals=0,
        bytes_accessed=int(4 * (n_pad * (max_len + 2 * d + 2)
                                + max_len * num_lin * d)),
    )

    out = pl.pallas_call(
        _mixed_kernel,
        out_shape=jax.ShapeDtypeStruct((n_pad, d), jnp.float32),
        grid_spec=pltpu.PrefetchScalarGridSpec(
            num_scalar_prefetch=2,
            grid=(n_pad // block_m,),
            in_specs=[
                pl.BlockSpec((block_m, 1), lambda i, xs, iv: (i, 0)),   # etype block
                pl.BlockSpec(memory_space=pl.ANY),                      # fixed_emb (HBM)
                pl.BlockSpec(memory_space=pl.ANY),                      # emb_weight (HBM)
                pl.BlockSpec((max_len, num_lin * d), lambda i, xs, iv: (0, 0)),
            ],
            out_specs=pl.BlockSpec((block_m, d), lambda i, xs, iv: (i, 0)),
            scratch_shapes=[
                pltpu.VMEM((block_m, max_len), jnp.float32),
                pltpu.VMEM((block_m, d), jnp.float32),
                pltpu.SemaphoreType.DMA((2, block_m)),
            ],
        ),
        compiler_params=pltpu.CompilerParams(
            dimension_semantics=("parallel",)),
        cost_estimate=cost,
    )(x_p, inv_p, etype_p, fixed_f32, emb_f32, w_all)
    return out[:n]


# ----------------------------------------------------------------------------
# Simple (emb_df is None) path kernel: plain embedding lookup via DMA gather
# ----------------------------------------------------------------------------
def _embed_kernel(idx_ref, table_hbm, out_ref, buf, sem):
    bm, d = out_ref.shape
    base = pl.program_id(0) * bm

    @pl.loop(0, bm)
    def _issue(j):
        pltpu.make_async_copy(table_hbm.at[idx_ref[base + j]],
                              buf.at[j], sem.at[j]).start()

    @pl.loop(0, bm)
    def _wait(j):
        pltpu.make_async_copy(table_hbm.at[0], buf.at[j], sem.at[j]).wait()

    out_ref[...] = buf[...]


def simple_embedding_forward(x_idx, emb_weight, *, block_m=128):
    n = int(x_idx.shape[0])
    num_emb, d = emb_weight.shape

    block_m = max(8, min(block_m, _round_up(n, 8)))
    n_pad = _round_up(max(n, block_m), block_m)
    pad = n_pad - n
    x_p = jnp.pad(x_idx.astype(jnp.int32), (0, pad))

    cost = pl.CostEstimate(flops=int(n_pad * d), transcendentals=0,
                           bytes_accessed=int(4 * 2 * n_pad * d))

    out = pl.pallas_call(
        _embed_kernel,
        out_shape=jax.ShapeDtypeStruct((n_pad, d), jnp.float32),
        grid_spec=pltpu.PrefetchScalarGridSpec(
            num_scalar_prefetch=1,
            grid=(n_pad // block_m,),
            in_specs=[pl.BlockSpec(memory_space=pl.ANY)],               # table (HBM)
            out_specs=pl.BlockSpec((block_m, d), lambda i, xs: (i, 0)),
            scratch_shapes=[
                pltpu.VMEM((block_m, d), jnp.float32),
                pltpu.SemaphoreType.DMA((block_m,)),
            ],
        ),
        compiler_params=pltpu.CompilerParams(
            dimension_semantics=("parallel",)),
        cost_estimate=cost,
    )(x_p, emb_weight.astype(jnp.float32))
    return out[:n]


# ----------------------------------------------------------------------------
# Deterministic synthetic parameter construction + test
# ----------------------------------------------------------------------------
if __name__ == "__main__":
    key = jax.random.PRNGKey(0)

    # Small shapes consistent with the module.
    num_embeddings = 64      # total node vocabulary
    embedding_dim = 128
    max_len = 16             # length of the fixed (pre-computed) embeddings
    num_lin = 2              # number of etype categories (Linear transforms)
    N = 256                  # number of query indices (-> grid of 2 parallel steps)

    # etype[v] in {0, 1, 2}: 0 -> learned embedding, t>0 -> Linear transform t.
    etype_all = (jnp.arange(num_embeddings) % (num_lin + 1)).astype(jnp.int32)

    # emb_inverse_index: consecutive ids for nodes that need a learned embedding.
    need_emb = etype_all == 0
    num_learned = int(jnp.sum(need_emb))
    inv_index = jnp.where(need_emb,
                          jnp.cumsum(need_emb.astype(jnp.int32)) - 1,
                          -1).astype(jnp.int32)

    k1, k2, k3, k4 = jax.random.split(key, 4)
    emb_weight = jax.random.normal(k1, (num_learned, embedding_dim), jnp.float32)
    fixed_emb = jax.random.normal(k2, (num_embeddings, max_len), jnp.float32)
    fixed_emb = jnp.where(need_emb[:, None], 0.0, fixed_emb)  # zeros for learned rows
    lin_weights = jax.random.normal(k3, (num_lin, embedding_dim, max_len),
                                    jnp.float32) * 0.1        # nn.Linear weight layout
    x = jax.random.randint(k4, (N,), 0, num_embeddings, jnp.int32)

    # ---- Pallas mixed path ----
    out = mixed_embedding_forward(x, etype_all, inv_index, fixed_emb,
                                  emb_weight, lin_weights)
    out = jax.block_until_ready(out)

    # ---- Pure-JAX reference ----
    etype_x = etype_all[x]
    inv_x = inv_index[x]
    fixed_rows = fixed_emb[x]
    emb_rows = jnp.where((inv_x >= 0)[:, None],
                         emb_weight[jnp.clip(inv_x, 0, num_learned - 1)], 0.0)
    ref = jnp.where((etype_x == 0)[:, None], emb_rows, 0.0)
    for t in range(num_lin):
        ref = ref + jnp.where((etype_x == t + 1)[:, None],
                              fixed_rows @ lin_weights[t].T, 0.0)
    assert jnp.allclose(out, ref, atol=1e-5, rtol=1e-5), "mixed path mismatch"

    # ---- Pallas simple path (emb_df is None branch) ----
    full_emb = jax.random.normal(k1, (num_embeddings, embedding_dim), jnp.float32)
    out_simple = jax.block_until_ready(simple_embedding_forward(x, full_emb))
    assert jnp.allclose(out_simple, full_emb[x], atol=1e-5, rtol=1e-5), \
        "simple path mismatch"

    print("KERNEL_OK")
</pallas_src>

<mosaic_0001>
module attributes {stable_mosaic.version = 11 : i64} {
  func.func @_mixed_kernel(%arg0: i32, %arg1: memref<256xi32, #tpu.memory_space<smem>>, %arg2: memref<256xi32, #tpu.memory_space<smem>>, %arg3: memref<128x1xi32, #tpu.memory_space<vmem>>, %arg4: memref<64x16xf32, #tpu.memory_space<any>>, %arg5: memref<22x128xf32, #tpu.memory_space<any>>, %arg6: memref<16x256xf32, #tpu.memory_space<vmem>>, %arg7: memref<128x128xf32, #tpu.memory_space<vmem>>, %arg8: memref<128x16xf32, #tpu.memory_space<vmem>>, %arg9: memref<128x128xf32, #tpu.memory_space<vmem>>, %arg10: memref<2x128x!tpu.dma_semaphore, #tpu.memory_space<semaphore_mem>>) attributes {dimension_semantics = [#tpu.dimension_semantics<parallel>], iteration_bounds = array<i64: 2>, scalar_prefetch = 2 : i64, scratch_operands = 3 : i64, tpu.core_type = #tpu.core_type<tc>, window_params = [{transform_indices = @transform_0, window_bounds = array<i64: 128, 1>}, {}, {}, {pipeline_mode = #tpu.pipeline_mode<synchronous>, transform_indices = @transform_3, window_bounds = array<i64: 16, 256>}, {transform_indices = @transform_4, window_bounds = array<i64: 128, 128>}]} {
    %c128_i32 = arith.constant 128 : i32
    %0 = arith.muli %arg0, %c128_i32 : i32
    %c0_i32 = arith.constant 0 : i32
    %c128_i32_0 = arith.constant 128 : i32
    %1 = arith.addi %c0_i32, %c128_i32_0 : i32
    %c1_i32 = arith.constant 1 : i32
    scf.for %arg11 = %c0_i32 to %1 step %c1_i32  : i32 {
      %c1_i32_20 = arith.constant 1 : i32
      %31 = arith.muli %arg11, %c1_i32_20 : i32
      %c0_i32_21 = arith.constant 0 : i32
      %32 = arith.addi %c0_i32_21, %31 : i32
      %33 = arith.addi %0, %32 : i32
      %34 = arith.index_cast %33 : i32 to index
      %35 = memref.load %arg1[%34] : memref<256xi32, #tpu.memory_space<smem>>
      %36 = arith.addi %0, %32 : i32
      %37 = arith.index_cast %36 : i32 to index
      %38 = memref.load %arg2[%37] : memref<256xi32, #tpu.memory_space<smem>>
      %c0_i32_22 = arith.constant 0 : i32
      %c0_i32_23 = arith.constant 0 : i32
      %39 = tpu.memref_slice %arg4[%35, %c0_i32_23] : memref<64x16xf32, #tpu.memory_space<any>> -> memref<1x16xf32, #tpu.memory_space<any>>
      %40 = tpu.memref_squeeze %39 : memref<1x16xf32, #tpu.memory_space<any>> -> memref<16xf32, #tpu.memory_space<any>>
      %c0_i32_24 = arith.constant 0 : i32
      %41 = tpu.memref_slice %arg8[%32, %c0_i32_24] : memref<128x16xf32, #tpu.memory_space<vmem>> -> memref<1x16xf32, #tpu.memory_space<vmem>>
      %42 = tpu.memref_squeeze %41 : memref<1x16xf32, #tpu.memory_space<vmem>> -> memref<16xf32, #tpu.memory_space<vmem>>
      %43 = tpu.memref_slice %arg10[%c0_i32_22, %32] : memref<2x128x!tpu.dma_semaphore, #tpu.memory_space<semaphore_mem>> -> memref<1x1x!tpu.dma_semaphore, #tpu.memory_space<semaphore_mem>>
      %44 = tpu.memref_squeeze %43 : memref<1x1x!tpu.dma_semaphore, #tpu.memory_space<semaphore_mem>> -> memref<!tpu.dma_semaphore, #tpu.memory_space<semaphore_mem>>
      tpu.enqueue_dma source(%40 : memref<16xf32, #tpu.memory_space<any>>) target(%42 : memref<16xf32, #tpu.memory_space<vmem>>) target_semaphore(%44 : memref<!tpu.dma_semaphore, #tpu.memory_space<semaphore_mem>>)
      %c1_i32_25 = arith.constant 1 : i32
      %c0_i32_26 = arith.constant 0 : i32
      %45 = tpu.memref_slice %arg5[%38, %c0_i32_26] : memref<22x128xf32, #tpu.memory_space<any>> -> memref<1x128xf32, #tpu.memory_space<any>>
      %46 = tpu.memref_squeeze %45 : memref<1x128xf32, #tpu.memory_space<any>> -> memref<128xf32, #tpu.memory_space<any>>
      %c0_i32_27 = arith.constant 0 : i32
      %47 = tpu.memref_slice %arg9[%32, %c0_i32_27] : memref<128x128xf32, #tpu.memory_space<vmem>> -> memref<1x128xf32, #tpu.memory_space<vmem>>
      %48 = tpu.memref_squeeze %47 : memref<1x128xf32, #tpu.memory_space<vmem>> -> memref<128xf32, #tpu.memory_space<vmem>>
      %49 = tpu.memref_slice %arg10[%c1_i32_25, %32] : memref<2x128x!tpu.dma_semaphore, #tpu.memory_space<semaphore_mem>> -> memref<1x1x!tpu.dma_semaphore, #tpu.memory_space<semaphore_mem>>
      %50 = tpu.memref_squeeze %49 : memref<1x1x!tpu.dma_semaphore, #tpu.memory_space<semaphore_mem>> -> memref<!tpu.dma_semaphore, #tpu.memory_space<semaphore_mem>>
      tpu.enqueue_dma source(%46 : memref<128xf32, #tpu.memory_space<any>>) target(%48 : memref<128xf32, #tpu.memory_space<vmem>>) target_semaphore(%50 : memref<!tpu.dma_semaphore, #tpu.memory_space<semaphore_mem>>)
    }
    %c128_i32_1 = arith.constant 128 : i32
    %c0_i32_2 = arith.constant 0 : i32
    %c128_i32_3 = arith.constant 128 : i32
    %2 = arith.addi %c0_i32_2, %c128_i32_3 : i32
    %c1_i32_4 = arith.constant 1 : i32
    scf.for %arg11 = %c0_i32_2 to %2 step %c1_i32_4  : i32 {
      %c1_i32_20 = arith.constant 1 : i32
      %31 = arith.muli %arg11, %c1_i32_20 : i32
      %c0_i32_21 = arith.constant 0 : i32
      %32 = arith.addi %c0_i32_21, %31 : i32
      %c0_i32_22 = arith.constant 0 : i32
      %c0_i32_23 = arith.constant 0 : i32
      %c0_i32_24 = arith.constant 0 : i32
      %33 = tpu.memref_slice %arg4[%c0_i32_22, %c0_i32_24] : memref<64x16xf32, #tpu.memory_space<any>> -> memref<1x16xf32, #tpu.memory_space<any>>
      %34 = tpu.memref_squeeze %33 : memref<1x16xf32, #tpu.memory_space<any>> -> memref<16xf32, #tpu.memory_space<any>>
      %c0_i32_25 = arith.constant 0 : i32
      %35 = tpu.memref_slice %arg8[%32, %c0_i32_25] : memref<128x16xf32, #tpu.memory_space<vmem>> -> memref<1x16xf32, #tpu.memory_space<vmem>>
      %36 = tpu.memref_squeeze %35 : memref<1x16xf32, #tpu.memory_space<vmem>> -> memref<16xf32, #tpu.memory_space<vmem>>
      %37 = tpu.memref_slice %arg10[%c0_i32_23, %32] : memref<2x128x!tpu.dma_semaphore, #tpu.memory_space<semaphore_mem>> -> memref<1x1x!tpu.dma_semaphore, #tpu.memory_space<semaphore_mem>>
      %38 = tpu.memref_squeeze %37 : memref<1x1x!tpu.dma_semaphore, #tpu.memory_space<semaphore_mem>> -> memref<!tpu.dma_semaphore, #tpu.memory_space<semaphore_mem>>
      tpu.wait_dma2 semaphore(%38 : memref<!tpu.dma_semaphore, #tpu.memory_space<semaphore_mem>>) src(%34 : memref<16xf32, #tpu.memory_space<any>>) dst(%36 : memref<16xf32, #tpu.memory_space<vmem>>)
      %c0_i32_26 = arith.constant 0 : i32
      %c1_i32_27 = arith.constant 1 : i32
      %c0_i32_28 = arith.constant 0 : i32
      %39 = tpu.memref_slice %arg5[%c0_i32_26, %c0_i32_28] : memref<22x128xf32, #tpu.memory_space<any>> -> memref<1x128xf32, #tpu.memory_space<any>>
      %40 = tpu.memref_squeeze %39 : memref<1x128xf32, #tpu.memory_space<any>> -> memref<128xf32, #tpu.memory_space<any>>
      %c0_i32_29 = arith.constant 0 : i32
      %41 = tpu.memref_slice %arg9[%32, %c0_i32_29] : memref<128x128xf32, #tpu.memory_space<vmem>> -> memref<1x128xf32, #tpu.memory_space<vmem>>
      %42 = tpu.memref_squeeze %41 : memref<1x128xf32, #tpu.memory_space<vmem>> -> memref<128xf32, #tpu.memory_space<vmem>>
      %43 = tpu.memref_slice %arg10[%c1_i32_27, %32] : memref<2x128x!tpu.dma_semaphore, #tpu.memory_space<semaphore_mem>> -> memref<1x1x!tpu.dma_semaphore, #tpu.memory_space<semaphore_mem>>
      %44 = tpu.memref_squeeze %43 : memref<1x1x!tpu.dma_semaphore, #tpu.memory_space<semaphore_mem>> -> memref<!tpu.dma_semaphore, #tpu.memory_space<semaphore_mem>>
      tpu.wait_dma2 semaphore(%44 : memref<!tpu.dma_semaphore, #tpu.memory_space<semaphore_mem>>) src(%40 : memref<128xf32, #tpu.memory_space<any>>) dst(%42 : memref<128xf32, #tpu.memory_space<vmem>>)
    }
    %c128_i32_5 = arith.constant 128 : i32
    %c0 = arith.constant 0 : index
    %c0_6 = arith.constant 0 : index
    %3 = vector.load %arg8[%c0, %c0_6] : memref<128x16xf32, #tpu.memory_space<vmem>>, vector<128x16xf32>
    %c0_7 = arith.constant 0 : index
    %c0_8 = arith.constant 0 : index
    %4 = vector.load %arg6[%c0_7, %c0_8] : memref<16x256xf32, #tpu.memory_space<vmem>>, vector<16x256xf32>
    %cst = arith.constant dense<0.000000e+00> : vector<128x256xf32>
    %5 = tpu.matmul %3, %4, %cst {dimension_numbers = #tpu.dot_dimension_numbers<[1], [0], [0], [1], [0, 0, 1, 1], [], []>} : vector<128x16xf32>, vector<16x256xf32>, vector<128x256xf32> -> vector<128x256xf32>
    %c0_9 = arith.constant 0 : index
    %c0_10 = arith.constant 0 : index
    %6 = vector.load %arg3[%c0_9, %c0_10] : memref<128x1xi32, #tpu.memory_space<vmem>>, vector<128x1xi32>
    %c0_i32_11 = arith.constant 0 : i32
    %7 = vector.broadcast %c0_i32_11 : i32 to vector<128x1xi32>
    %8 = arith.cmpi eq, %6, %7 : vector<128x1xi32>
    %c0_12 = arith.constant 0 : index
    %c0_13 = arith.constant 0 : index
    %9 = vector.load %arg9[%c0_12, %c0_13] : memref<128x128xf32, #tpu.memory_space<vmem>>, vector<128x128xf32>
    %cst_14 = arith.constant 0.000000e+00 : f32
    %10 = vector.shape_cast %8 : vector<128x1xi1> to vector<128x1xi1>
    %11 = vector.broadcast %10 : vector<128x1xi1> to vector<128x128xi1>
    %12 = vector.broadcast %cst_14 : f32 to vector<128x128xf32>
    %13 = arith.select %11, %9, %12 : vector<128x128xi1>, vector<128x128xf32>
    %c1_i32_15 = arith.constant 1 : i32
    %14 = vector.broadcast %c1_i32_15 : i32 to vector<128x1xi32>
    %15 = arith.cmpi eq, %6, %14 : vector<128x1xi32>
    %16 = vector.extract_strided_slice %5 {offsets = [0, 0], sizes = [128, 128], strides = [1, 1]} : vector<128x256xf32> to vector<128x128xf32>
    %cst_16 = arith.constant 0.000000e+00 : f32
    %17 = vector.shape_cast %15 : vector<128x1xi1> to vector<128x1xi1>
    %18 = vector.broadcast %17 : vector<128x1xi1> to vector<128x128xi1>
    %19 = vector.broadcast %cst_16 : f32 to vector<128x128xf32>
    %20 = arith.select %18, %16, %19 : vector<128x128xi1>, vector<128x128xf32>
    %21 = arith.addf %13, %20 : vector<128x128xf32>
    %c2_i32 = arith.constant 2 : i32
    %22 = vector.broadcast %c2_i32 : i32 to vector<128x1xi32>
    %23 = arith.cmpi eq, %6, %22 : vector<128x1xi32>
    %24 = vector.extract_strided_slice %5 {offsets = [0, 128], sizes = [128, 128], strides = [1, 1]} : vector<128x256xf32> to vector<128x128xf32>
    %cst_17 = arith.constant 0.000000e+00 : f32
    %25 = vector.shape_cast %23 : vector<128x1xi1> to vector<128x1xi1>
    %26 = vector.broadcast %25 : vector<128x1xi1> to vector<128x128xi1>
    %27 = vector.broadcast %cst_17 : f32 to vector<128x128xf32>
    %28 = arith.select %26, %24, %27 : vector<128x128xi1>, vector<128x128xf32>
    %29 = arith.addf %21, %28 : vector<128x128xf32>
    %c0_18 = arith.constant 0 : index
    %c0_19 = arith.constant 0 : index
    %30 = vector.load %arg7[%c0_18, %c0_19] : memref<128x128xf32, #tpu.memory_space<vmem>>, vector<128x128xf32>
    tpu.vector_store %arg7[%c0_18, %c0_19], %29 {strides = array<i32>} : memref<128x128xf32, #tpu.memory_space<vmem>>, vector<128x128xf32>,
    return
  }
  func.func @transform_0(%arg0: i32, %arg1: memref<256xi32, #tpu.memory_space<smem>>, %arg2: memref<256xi32, #tpu.memory_space<smem>>) -> (i32, i32) {
    %c0_i32 = arith.constant 0 : i32
    %c0_i32_0 = arith.constant 0 : i32
    return %arg0, %c0_i32 : i32, i32
  }
  func.func @transform_3(%arg0: i32, %arg1: memref<256xi32, #tpu.memory_space<smem>>, %arg2: memref<256xi32, #tpu.memory_space<smem>>) -> (i32, i32) {
    %c0_i32 = arith.constant 0 : i32
    %c0_i32_0 = arith.constant 0 : i32
    %c0_i32_1 = arith.constant 0 : i32
    return %c0_i32, %c0_i32_0 : i32, i32
  }
  func.func @transform_4(%arg0: i32, %arg1: memref<256xi32, #tpu.memory_space<smem>>, %arg2: memref<256xi32, #tpu.memory_space<smem>>) -> (i32, i32) {
    %c0_i32 = arith.constant 0 : i32
    %c0_i32_0 = arith.constant 0 : i32
    return %arg0, %c0_i32 : i32, i32
  }
}

</mosaic_0001>

<bundles_post_ra>
// kernel: tpu_custom_call.1
= control target key start
LH: loop header
LB: loop body
LE: loop exit
PB: predicated region body
PF: predicated region fallthrough
CT: control target
= control target key end

     0   :  { %s3839_s0 = inlined_call_operand.vmem [shape: s32[256], index: 0, kind: input, shape index: {}]   ;;  %s3840_s2 = inlined_call_operand.vmem [shape: s32[256,1], index: 2, kind: input, shape index: {}]   ;;  %s3841_s3 = inlined_call_operand.vmem [shape: f32[64,16], index: 3, kind: input, shape index: {}]   ;;  %s3842_s4 = inlined_call_operand.vmem [shape: f32[22,128], index: 4, kind: input, shape index: {}]   ;;  %s3843_s5 = inlined_call_operand.vmem [shape: f32[16,256], index: 5, kind: input, shape index: {}]   ;;  %s3844_s6 = inlined_call_operand.hbm [shape: f32[256,128], index: 6, kind: output, shape index: {}]   ;;  %s3845_s1 = inlined_call_operand.vmem [shape: s32[256], index: 1, kind: input, shape index: {}]  }
   0x1   :  { %s11_s23 = sshll.u32 %s3839_s0, 4  ;;  %s15_s26 = sshll.u32 %s3845_s1, 4  ;;  %s12_s23 = int_to_ptr.vmem [resolvable:$true] %s11_s23  ;;  %s16_s26 = int_to_ptr.vmem [resolvable:$true] %s15_s26 }
   0x2   :  { %s3185_s27 = scalar_lea.vmem %s12_s23, 32  ;;  %p3190_p1 = scmp.lt.s32.totalorder %s12_s23, %s12_s23 }
   0x3   :  { %p3186_p0 = scmp.ne.s32.totalorder %s12_s23, %s3185_s27  ;;  %p3191_p2 = scmp.lt.s32.totalorder %s3185_s27, %s3185_s27 }
   0x5   :  { %p3192_p3 = por %p3191_p2, %p3190_p1 }
   0x7   :  { %p3193_p4 = pnand %p3192_p3, %p3186_p0 }
   0x9   :  { %3196 = shalt.err (!%p3193_p4)  }
   0xa   :  { %s3295_s28 = smov [#allocation6]   ;;  %s3197_s29 = scalar_lea.vmem %s16_s26, 32 }
   0xb   :  { %14 = dma.vmem_to_smem %s12_s23, 32, %s3295_s28, [#allocation5] }
   0xc   :  { %p3198_p5 = scmp.ne.s32.totalorder %s16_s26, %s3197_s29  ;;  %p3202_p6 = scmp.lt.s32.totalorder %s16_s26, %s16_s26 }
   0xd   :  { %p3203_p7 = scmp.lt.s32.totalorder %s3197_s29, %s3197_s29 }
   0xf   :  { %p3204_p8 = por %p3203_p7, %p3202_p6 }
  0x11   :  { %p3205_p9 = pnand %p3204_p8, %p3198_p5 }
  0x13   :  { %3208 = shalt.err (!%p3205_p9)  }
  0x14   :  { %s3296_s0 = smov [#allocation7]  }
  0x15   :  { %18 = dma.vmem_to_smem %s16_s26, 32, %s3296_s0, [#allocation5] }
  0x16   :  { %3261 = dma.done.wait [#allocation5], 64 }
  0x17   :  { %3262 = vsyncadd [#allocation5], 4294967232 }
  0x18   :  { %20 = sfence }
  0x19   :  { %21 = vsyncpa [#allocation9], 0 }
  0x1a   :  { %23 = vsyncpa [#allocation9 + $0x1], 0  ;;  %s3343_s1 = smov 0   ;;  %s3345_s30 = smov 0  }
  0x1b   :  { %s3347_s7 = smov 0   ;;  %s3349_s8 = smov 0  }
  0x1c LB: > { %s3364_s9 = sadd.s32 4294967295, %s3285_s8   ;;  %s2830_s10 = sadd.s32 4294967294, %s3285_s8   ;;  %s3285_s8 = sphi %s3349_s8, %s3853_s8   ;;  %s3281_s7 = sphi %s3347_s7, %s3852_s7   ;;  %s3277_s30 = sphi %s3345_s30, %s3851_s30   ;;  %s3273_s1 = sphi %s3343_s1, %s3850_s1  }
  0x1d   : > { %s3368_s11 = sadd.s32 1, %s3285_s8   ;;  %s83_s12 = sadd.s32 1, %s3281_s7 }
  0x1e   : > { %s80_s13 = ssub.s32 %s3285_s8, %s3368_s11  ;;  %p93_p10 = scmp.ne.s32.totalorder %s3281_s7, %s3277_s30 }
  0x1f   : > { %p81_p11 = scmp.eq.s32.totalorder %s80_s13, 0  ;;  %p94_p12 = scmp.eq.s32.totalorder %s3364_s9, 1 }
  0x20   : > { %p99_p13 = scmp.ne.s32.totalorder %s3277_s30, %s3273_s1  ;;  %p100_p0 = scmp.eq.s32.totalorder %s2830_s10, 1 }
  0x21   : > { %s3379_s14 = scalar_select %p81_p11, %s3281_s7, %s83_s12  }
  0x22   : > { %p3381_p1 = por %p94_p12, %p93_p10  ;;  %p3385_p2 = por %p100_p0, %p99_p13 }
  0x23   : > { %p2833_p3 = scmp.ge.s32.totalorder %s3285_s8, 1  ;;  %p130_p4 = scmp.lt.s32.totalorder %s3285_s8, 3 }
  0x25   : > { %p131_p5 = pnand %p2833_p3, %p130_p4 }
  0x26   : > { %s3846_s17 = sand.u32 (!%p131_p5), 1, %s3277_s30   ;;  %s2835_s18 = sshll.u32 (!%p131_p5), %s3364_s9, 4 }
  0x27   : > { %134 = sbr.rel (%p131_p5) target bundleno = 346 (0x15a), region = 28  ;;  %s2834_s19 = sshll.u32 (!%p131_p5), %s3846_s17, 7 }
  0x28   : > { %p153_p6 = scmp.lt.s32.totalorder (!%p131_p5), %s2835_s18, 31  ;;  %s2837_s20 = sshll.u32 (!%p131_p5), %s3364_s9, 7 }
  0x29   : > { %s3401_s25 = scalar_lea.vmem (!%p131_p5), [#allocation8], %s2834_s19  ;;  %s3287_s26 = smov (!%p131_p5), 0  }
  0x2e   : > { %s3855_s18 = smov (!%p153_p6, %s2835_s18), 31 }
  0x2f   : > { %s2836_s21 = sshll.u32 %s3855_s18, 3 }
  0x30   : > { %s3399_s24 = scalar_lea.vmem %s3840_s2, %s2836_s21 }
  0x31 LB: >> { %s166_s27 = sadd.s32 %s3289_s26, %s2837_s20  ;;  %s170_s13 = scalar_lea.vmem [#allocation2], %s3289_s26  ;;  %s3289_s26 = sphi %s3287_s26, %s165_s26  }
  0x32   : >> { %s167_s28 = sld [smem:[#allocation6 + %s166_s27]]  ;;  %s171_s18 = scalar_lea.sflag [#allocation4], %s3289_s26 }
  0x33   : >> { %s168_s29 = sld [smem:[#allocation7 + %s166_s27]] }
  0x38   : >> { %s169_s12 = scalar_lea.vmem %s3841_s3, %s167_s28 }
  0x39   : >> { %v189_v0 = vld [vmem:[%s169_s12] sm:$0x1] }
  0x3a   : >> { %190 = vst [vmem:[%s170_s13] sm:$0x1] %v189_v0 }
  0x3b   : >> { %215 = vsyncadd %s171_s18, 16  ;;  %s216_s19 = scalar_lea.vmem %s3842_s4, %s168_s29  ;;  %s2769_s23 = scalar_lea.sflag %s171_s18, 128 [#allocation4] }
  0x3c   : >> { %v237_v1 = vld [vmem:[%s216_s19] sm:$0x1]  ;;  %s217_s17 = scalar_lea.vmem [#allocation3], %s3289_s26 }
  0x3d   : >> { %238 = vst [vmem:[%s217_s17] sm:$0x1] %v237_v1 }
  0x3e   : >> { %263 = vsyncadd %s2769_s23, 16  ;;  %s165_s26 = sadd.s32 1, %s3289_s26  }
  0x3f   : >> { %p162_p7 = scmp.ge.s32.totalorder %s165_s26, 128  }
  0x40   : > { %s3291_s27 = smov (%p162_p7), 0  }
  0x41   : > { %164 = sbr.rel (!%p162_p7) target bundleno = 49 (0x31), region = 420 }
  0x48 LB: >> { %s270_s28 = scalar_lea.sflag [#allocation4], %s3293_s27  ;;  %s3293_s27 = sphi %s3291_s27, %s269_s27  }
  0x49   : >> { %3263 = dma.done.wait %s270_s28, 16 }
  0x4a   : >> { %3264 = vsyncadd %s270_s28, 4294967280  ;;  %s2774_s0 = scalar_lea.sflag %s270_s28, 128 [#allocation4] }
  0x4b   : >> { %3265 = dma.done.wait %s2774_s0, 16 }
  0x4c   : >> { %3266 = vsyncadd %s2774_s0, 4294967280  ;;  %s269_s27 = sadd.s32 1, %s3293_s27  }
  0x4d   : >> { %p266_p8 = scmp.ge.s32.totalorder %s269_s27, 128  }
  0x4e   : > { %v3410_v2 = vld [vmem:[%s3399_s24 + $0x10] sm:$0xff] (%p266_p8)  ;;  %v3413_v3 = vld [vmem:[%s3399_s24] sm:$0xff] (%p266_p8)  ;;  %v294_v4 = vld [vmem:[%s3843_s5 + $0x8] sm:$0xff] (%p266_p8)  ;;  %v3297_v5 = vmov (%p266_p8), 0   ;;  %v3298_v13 = vmov (%p266_p8), 0.0   ;;  %vm297_vm4 = vcmask (%p266_p8), 130048  }
  0x4f   : > { %268 = sbr.rel (!%p266_p8) target bundleno = 72 (0x48), region = 431  ;;  %3184 = vset.pattern.permute.xlu1 (%p266_p8), %v3297_v5  ;;  %3183 = vset.pattern.permute.xlu0 (%p266_p8), %v3297_v5  ;;  %vm525_vm0 = vcmp.eq.s32.totalorder (%p266_p8), %v3410_v2, 0  ;;  %vm523_vm1 = vcmp.eq.s32.totalorder (%p266_p8), %v3413_v3, 0  ;;  %v296_v6 = vld [vmem:[%s3843_s5 + $0x18] sm:$0xff] (%p266_p8)  ;;  %v293_v7 = vld [vmem:[%s3843_s5] sm:$0xff] (%p266_p8)  ;;  %v295_v8 = vld [vmem:[%s3843_s5 + $0x10] sm:$0xff] (%p266_p8) }
  0x50   : > { %v557_v9 = vsel (%p266_p8), %vm525_vm0, 1, %v3297_v5  ;;  %v555_v10 = vsel (%p266_p8), %vm523_vm1, 1, %v3297_v5  ;;  %v3116_v11 = vpack.c.bf16 (%p266_p8), %v296_v6, %v294_v4  ;;  %v3118_v12 = vpack.c.bf16 (%p266_p8), %v295_v8, %v293_v7  ;;  %410 = vmatprep.mubr.f32.mxu0 (%p266_p8), %v3298_v13  ;;  %458 = vmatprep.mubr.f32.mxu1 (%p266_p8), %v3298_v13  ;;  %v3436_v14 = vld [vmem:[%s3399_s24 + $0x18] sm:$0xff] (%p266_p8)  ;;  %v3439_v15 = vld [vmem:[%s3399_s24 + $0x8] sm:$0xff] (%p266_p8)  ;;  %v3447_v17 = vld [vmem:[%s3399_s24 + $0x20] sm:$0xff] (%p266_p8)  ;;  %s937_s21 = sshll.u32 (%p266_p8), %s3401_s25, 4  ;;  %s3792_s21 = int_to_ptr.vmem [resolvable:$true] %s937_s21 }
  0x51   : > { %578 = vperm.xlu1 (%p266_p8), %3184, %v557_v9   ;;  %572 = vperm.xlu0 (%p266_p8), %3183, %v555_v10   ;;  %vm526_vm2 = vcmp.eq.s32.totalorder (%p266_p8), %v3436_v14, 0  ;;  %vm524_vm3 = vcmp.eq.s32.totalorder (%p266_p8), %v3439_v15, 0  ;;  %v3444_v16 = vld [vmem:[%s3399_s24 + $0x28] sm:$0xff] (%p266_p8)  ;;  %v277_v20 = vld [vmem:[#allocation2] sm:$0xff] (%p266_p8)  ;;  %vm527_vm6 = vcmp.eq.s32.totalorder (%p266_p8), %v3447_v17, 0  ;;  %v3454_v22 = vld [vmem:[%s3399_s24 + $0x38] sm:$0xff] (%p266_p8) }
  0x52   : > { %3117 = vmatprep.subr.bf16.mxu0 (%p266_p8), %v3116_v11  ;;  %3120 = vmatprep.subr.bf16.mxu1 (%p266_p8), %v3116_v11  ;;  %v558_v18 = vsel (%p266_p8), %vm526_vm2, 1, %v3297_v5  ;;  %v556_v19 = vsel (%p266_p8), %vm524_vm3, 1, %v3297_v5  ;;  %v285_v21 = vld [vmem:[#allocation2 + $0x40] sm:$0xff] (%p266_p8)  ;;  %vm528_vm5 = vcmp.eq.s32.totalorder (%p266_p8), %v3444_v16, 0  ;;  %v3457_v23 = vld [vmem:[%s3399_s24 + $0x30] sm:$0xff] (%p266_p8)  ;;  %v559_v25 = vsel (%p266_p8), %vm527_vm6, 1, %v3297_v5 }
  0x53   : > { %3119 = vmatpush1.bf16.msra.mxu0 (%p266_p8), %v3118_v12  ;;  %3121 = vmatpush1.bf16.msra.mxu1 (%p266_p8), %v3118_v12  ;;  %v560_v24 = vsel (%p266_p8), %vm528_vm5, 1, %v3297_v5  ;;  %v278_v26 = vld [vmem:[#allocation2 + $0x8] sm:$0xff] (%p266_p8)  ;;  %vm530_vm7 = vcmp.eq.s32.totalorder (%p266_p8), %v3454_v22, 0  ;;  %vm529_vm8 = vcmp.eq.s32.totalorder (%p266_p8), %v3457_v23, 0  ;;  %v3471_v29 = vld [vmem:[%s3399_s24 + $0x40] sm:$0xff] (%p266_p8)  ;;  %v279_v32 = vld [vmem:[#allocation2 + $0x10] sm:$0xff] (%p266_p8) }
  0x54   : > { %v286_v27 = vld [vmem:[#allocation2 + $0x48] sm:$0xff] (%p266_p8)  ;;  %v562_v30 = vsel (%p266_p8), %vm530_vm7, 1, %v3297_v5  ;;  %v561_v31 = vsel (%p266_p8), %vm529_vm8, 1, %v3297_v5  ;;  %v3478_v33 = vld [vmem:[%s3399_s24 + $0x58] sm:$0xff] (%p266_p8)  ;;  %v3481_v34 = vld [vmem:[%s3399_s24 + $0x50] sm:$0xff] (%p266_p8)  ;;  %vm531_vm10 = vcmp.eq.s32.totalorder (%p266_p8), %v3471_v29, 0 }
  0x55   : > { %581 = vperm.xlu1 (%p266_p8), %3184, %v558_v18   ;;  %575 = vperm.xlu0 (%p266_p8), %3183, %v556_v19   ;;  %v3468_v28 = vld [vmem:[%s3399_s24 + $0x48] sm:$0xff] (%p266_p8)  ;;  %v287_v35 = vld [vmem:[#allocation2 + $0x50] sm:$0xff] (%p266_p8)  ;;  %v3491_v37 = vld [vmem:[%s3399_s24 + $0x60] sm:$0xff] (%p266_p8)  ;;  %vm534_vm11 = vcmp.eq.s32.totalorder (%p266_p8), %v3478_v33, 0  ;;  %vm533_vm12 = vcmp.eq.s32.totalorder (%p266_p8), %v3481_v34, 0  ;;  %v563_v39 = vsel (%p266_p8), %vm531_vm10, 1, %v3297_v5 }
  0x56   : > { %2838 = vmatmul.mubr.msk.f32.vlgmr.msra.gmra.mrb[0].mxu0 %vm297_vm4, %v277_v20  ;;  %2846 = vmatmul.mubr.msk.f32.vlgmr.msra.gmra.mrb[0].mxu1 %vm297_vm4, %v285_v21  ;;  %vm532_vm9 = vcmp.eq.s32.totalorder %v3468_v28, 0  ;;  %v3488_v36 = vld [vmem:[%s3399_s24 + $0x68] sm:$0xff]  ;;  %vm535_vm14 = vcmp.eq.s32.totalorder %v3491_v37, 0  ;;  %v3502_v40 = vld [vmem:[%s3399_s24 + $0x78] sm:$0xff]  ;;  %v3507_v43 = vld [vmem:[%s3399_s24 + $0x70] sm:$0xff]  ;;  %v566_v44 = vsel %vm534_vm11, 1, %v3297_v5 }
  0x57   : > { %416 = vmatprep.mubr.f32.mxu0 %v3298_v13  ;;  %464 = vmatprep.mubr.f32.mxu1 %v3298_v13  ;;  %v564_v38 = vsel %vm532_vm9, 1, %v3297_v5  ;;  %vm536_vm13 = vcmp.eq.s32.totalorder %v3488_v36, 0  ;;  %v280_v41 = vld [vmem:[#allocation2 + $0x18] sm:$0xff]  ;;  %v565_v45 = vsel %vm533_vm12, 1, %v3297_v5  ;;  %v567_v47 = vsel %vm535_vm14, 1, %v3297_v5  ;;  %v281_v49 = vld [vmem:[#allocation2 + $0x20] sm:$0xff] }
  0x58   : > { %v288_v42 = vld [vmem:[#allocation2 + $0x58] sm:$0xff]  ;;  %v568_v46 = vsel %vm536_vm13, 1, %v3297_v5  ;;  %vm538_vm15 = vcmp.eq.s32.totalorder %v3502_v40, 0  ;;  %vm779_vm0 = vcmp.eq.s32.totalorder %v3413_v3, 2  ;;  %vm537_vm1 = vcmp.eq.s32.totalorder %v3507_v43, 0  ;;  %v289_v50 = vld [vmem:[#allocation2 + $0x60] sm:$0xff] }
  0x59   : > { %587 = vperm.xlu1 %3184, %v560_v24   ;;  %584 = vperm.xlu0 %3183, %v559_v25   ;;  %v3519_v48 = vsel %vm779_vm0, 1, %v3297_v5  ;;  %vm782_vm2 = vcmp.eq.s32.totalorder %v3436_v14, 2  ;;  %vm781_vm3 = vcmp.eq.s32.totalorder %v3410_v2, 2  ;;  %vm784_vm5 = vcmp.eq.s32.totalorder %v3444_v16, 2  ;;  %v282_v59 = vld [vmem:[#allocation2 + $0x28] sm:$0xff]  ;;  %v283_v8 = vld [vmem:[#allocation2 + $0x30] sm:$0xff] }
  0x5a   : > { %2839 = vmatmul.mubr.msk.f32.gmra.mrb[2].mxu0 %vm297_vm4, %v278_v26  ;;  %2847 = vmatmul.mubr.msk.f32.gmra.mrb[2].mxu1 %vm297_vm4, %v286_v27  ;;  %v3526_v51 = vsel %vm782_vm2, 1, %v3297_v5  ;;  %v3529_v52 = vsel %vm781_vm3, 1, %v3297_v5  ;;  %vm783_vm6 = vcmp.eq.s32.totalorder %v3447_v17, 2  ;;  %v3534_v53 = vsel %vm784_vm5, 1, %v3297_v5  ;;  %v290_v60 = vld [vmem:[#allocation2 + $0x68] sm:$0xff]  ;;  %v291_v9 = vld [vmem:[#allocation2 + $0x70] sm:$0xff] }
  0x5b   : > { %422 = vmatprep.mubr.f32.mxu0 %v3298_v13  ;;  %470 = vmatprep.mubr.f32.mxu1 %v3298_v13  ;;  %v3537_v54 = vsel %vm783_vm6, 1, %v3297_v5  ;;  %vm786_vm7 = vcmp.eq.s32.totalorder %v3454_v22, 2  ;;  %vm785_vm8 = vcmp.eq.s32.totalorder %v3457_v23, 2  ;;  %vm788_vm9 = vcmp.eq.s32.totalorder %v3468_v28, 2  ;;  %v284_v12 = vld [vmem:[#allocation2 + $0x38] sm:$0xff]  ;;  %s3115_s24 = sshll.u32 %s3364_s9, 11 }
  0x5c   : > { %v3542_v55 = vsel %vm786_vm7, 1, %v3297_v5  ;;  %v3545_v56 = vsel %vm785_vm8, 1, %v3297_v5  ;;  %vm787_vm10 = vcmp.eq.s32.totalorder %v3471_v29, 2  ;;  %v3552_v57 = vsel %vm788_vm9, 1, %v3297_v5  ;;  %v292_v18 = vld [vmem:[#allocation2 + $0x78] sm:$0xff]  ;;  %s3790_s19 = scalar_lea.hbm %s3844_s6, %s3115_s24  ;;  %s3849_s23 = sand.u32 1, %s3277_s30  }
  0x5d   : > { %593 = vperm.xlu1 %3184, %v562_v30   ;;  %590 = vperm.xlu0 %3183, %v561_v31   ;;  %v3555_v58 = vsel %vm787_vm10, 1, %v3297_v5  ;;  %vm790_vm11 = vcmp.eq.s32.totalorder %v3478_v33, 2  ;;  %vm789_vm12 = vcmp.eq.s32.totalorder %v3481_v34, 2  ;;  %vm792_vm13 = vcmp.eq.s32.totalorder %v3488_v36, 2  ;;  %s3798_s27 = scalar_lea.sflag [#allocation9], %s3849_s23  ;;  %s3209_s28 = scalar_lea.vmem %s3792_s21, 2048 }
  0x5e   : > { %2840 = vmatmul.mubr.msk.f32.gmra.mrb[4].mxu0 %vm297_vm4, %v279_v32  ;;  %2848 = vmatmul.mubr.msk.f32.gmra.mrb[4].mxu1 %vm297_vm4, %v287_v35  ;;  %v3562_v61 = vsel %vm790_vm11, 1, %v3297_v5  ;;  %v3565_v62 = vsel %vm789_vm12, 1, %v3297_v5  ;;  %vm791_vm14 = vcmp.eq.s32.totalorder %v3491_v37, 2  ;;  %v3570_v63 = vsel %vm792_vm13, 1, %v3297_v5  ;;  %p3210_p9 = scmp.ne.s32.totalorder %s3792_s21, %s3209_s28  ;;  %s3299_s0 = smov [#allocation8]  }
  0x5f   : > { %428 = vmatprep.mubr.f32.mxu0 %v3298_v13  ;;  %476 = vmatprep.mubr.f32.mxu1 %v3298_v13  ;;  %v3573_v0 = vsel %vm791_vm14, 1, %v3297_v5  ;;  %vm794_vm0 = vcmp.eq.s32.totalorder %v3502_v40, 2  ;;  %vm793_vm2 = vcmp.eq.s32.totalorder %v3507_v43, 2  ;;  %v570_v6 = vsel %vm538_vm15, 1, %v3297_v5  ;;  %s3213_s17 = sshll.u32 %s3299_s0, 4  ;;  %s3214_s17 = int_to_ptr.vmem [resolvable:$false] %s3213_s17 }
  0x60   : > { %v3578_v1 = vsel %vm794_vm0, 1, %v3297_v5  ;;  %v3581_v4 = vsel %vm793_vm2, 1, %v3297_v5  ;;  %v569_v7 = vsel %vm537_vm1, 1, %v3297_v5  ;;  %vm652_vm3 = vcmp.eq.s32.totalorder %v3439_v15, 1  ;;  %p3211_p10 = pnand %p3210_p9, %p3381_p1  ;;  %s3215_s20 = scalar_lea.vmem %s3214_s17, 4096 }
  0x61   : > { %599 = vperm.xlu1 %3184, %v564_v38   ;;  %596 = vperm.xlu0 %3183, %v563_v39   ;;  %vm651_vm5 = vcmp.eq.s32.totalorder %v3413_v3, 1  ;;  %v668_v10 = vsel %vm652_vm3, 1, %v3297_v5  ;;  %vm654_vm15 = vcmp.eq.s32.totalorder %v3436_v14, 1  ;;  %vm653_vm1 = vcmp.eq.s32.totalorder %v3410_v2, 1  ;;  %p3216_p12 = scmp.lt.s32.totalorder %s3792_s21, %s3214_s17  ;;  %p3217_p13 = scmp.lt.s32.totalorder %s3215_s20, %s3209_s28 }
  0x62   : > { %2841 = vmatmul.mubr.msk.f32.gmra.mrb[6].mxu0 %vm297_vm4, %v280_v41  ;;  %2849 = vmatmul.mubr.msk.f32.gmra.mrb[6].mxu1 %vm297_vm4, %v288_v42  ;;  %v667_v11 = vsel %vm651_vm5, 1, %v3297_v5  ;;  %v670_v3 = vsel %vm654_vm15, 1, %v3297_v5  ;;  %v669_v19 = vsel %vm653_vm1, 1, %v3297_v5  ;;  %vm656_vm6 = vcmp.eq.s32.totalorder %v3444_v16, 1  ;;  %p3212_p11 = pneg %p3211_p10 }
  0x63   : > { %434 = vmatprep.mubr.f32.mxu0 %v3298_v13  ;;  %482 = vmatprep.mubr.f32.mxu1 %v3298_v13  ;;  %vm655_vm7 = vcmp.eq.s32.totalorder %v3447_v17, 1  ;;  %vm658_vm8 = vcmp.eq.s32.totalorder %v3454_v22, 1  ;;  %vm657_vm9 = vcmp.eq.s32.totalorder %v3457_v23, 1  ;;  %vm659_vm10 = vcmp.eq.s32.totalorder %v3471_v29, 1  ;;  %p3218_p0 = por %p3217_p13, %p3216_p12 }
  0x64   : > { %v671_v2 = vsel %vm655_vm7, 1, %v3297_v5  ;;  %v674_v14 = vsel %vm658_vm8, 1, %v3297_v5  ;;  %v673_v20 = vsel %vm657_vm9, 1, %v3297_v5  ;;  %v675_v17 = vsel %vm659_vm10, 1, %v3297_v5 }
  0x65   : > { %605 = vperm.xlu1 %3184, %v566_v44   ;;  %602 = vperm.xlu0 %3183, %v565_v45   ;;  %vm662_vm11 = vcmp.eq.s32.totalorder %v3478_v33, 1  ;;  %vm661_vm12 = vcmp.eq.s32.totalorder %v3481_v34, 1  ;;  %vm664_vm13 = vcmp.eq.s32.totalorder %v3488_v36, 1  ;;  %vm663_vm14 = vcmp.eq.s32.totalorder %v3491_v37, 1  ;;  %p3219_p3 = pnand %p3218_p0, %p3212_p11 }
  0x66   : > { %2842 = vmatmul.mubr.msk.f32.gmra.mrb[8].mxu0 %vm297_vm4, %v281_v49  ;;  %2850 = vmatmul.mubr.msk.f32.gmra.mrb[8].mxu1 %vm297_vm4, %v289_v50  ;;  %v678_v21 = vsel %vm662_vm11, 1, %v3297_v5  ;;  %v677_v22 = vsel %vm661_vm12, 1, %v3297_v5  ;;  %v680_v23 = vsel %vm664_vm13, 1, %v3297_v5  ;;  %v679_v24 = vsel %vm663_vm14, 1, %v3297_v5 }
  0x67   : > { %440 = vmatprep.mubr.f32.mxu0 %v3298_v13  ;;  %488 = vmatprep.mubr.f32.mxu1 %v3298_v13  ;;  %vm666_vm0 = vcmp.eq.s32.totalorder %v3502_v40, 1  ;;  %vm665_vm2 = vcmp.eq.s32.totalorder %v3507_v43, 1  ;;  %vm780_vm3 = vcmp.eq.s32.totalorder %v3439_v15, 2 }
  0x68   : > { %v682_v25 = vsel %vm666_vm0, 1, %v3297_v5  ;;  %v681_v26 = vsel %vm665_vm2, 1, %v3297_v5  ;;  %v796_v27 = vsel %vm780_vm3, 1, %v3297_v5 }
  0x69   : > { %611 = vperm.xlu1 %3184, %v568_v46   ;;  %608 = vperm.xlu0 %3183, %v567_v47  }
  0x6a   : > { %2843 = vmatmul.mubr.msk.f32.gmra.mrb[10].mxu0 %vm297_vm4, %v282_v59  ;;  %2851 = vmatmul.mubr.msk.f32.gmra.mrb[10].mxu1 %vm297_vm4, %v290_v60 }
  0x6b   : > { %446 = vmatprep.mubr.f32.mxu0 %v3298_v13  ;;  %494 = vmatprep.mubr.f32.mxu1 %v3298_v13 }
  0x6d   : > { %617 = vperm.xlu1 %3184, %v570_v6   ;;  %614 = vperm.xlu0 %3183, %v569_v7   ;;  %v547_v6 = vld [vmem:[#allocation3 + $0x40] sm:$0xff] }
  0x6e   : > { %2844 = vmatmul.mubr.msk.f32.gmra.mrb[12].mxu0 %vm297_vm4, %v283_v8  ;;  %2852 = vmatmul.mubr.msk.f32.gmra.mrb[12].mxu1 %vm297_vm4, %v291_v9  ;;  %v540_v9 = vld [vmem:[#allocation3 + $0x8] sm:$0xff] }
  0x6f   : > { %452 = vmatprep.mubr.f32.mxu0 %v3298_v13  ;;  %500 = vmatprep.mubr.f32.mxu1 %v3298_v13  ;;  %v672_v13 = vsel %vm656_vm6, 1, %v3297_v5 }
  0x71   : > { %687 = vperm.xlu1 %3184, %v668_v10   ;;  %684 = vperm.xlu0 %3183, %v667_v11   ;;  %v548_v10 = vld [vmem:[#allocation3 + $0x48] sm:$0xff] }
  0x72   : > { %2845 = vmatmul.mubr.msk.f32.gmra.mrb[14].mxu0 %vm297_vm4, %v284_v12  ;;  %2853 = vmatmul.mubr.msk.f32.gmra.mrb[14].mxu1 %vm297_vm4, %v292_v18  ;;  %vm660_vm4 = vcmp.eq.s32.totalorder %v3468_v28, 1 }
  0x73   : > { %v676_v16 = vsel %vm660_vm4, 1, %v3297_v5 }
  0x75   : > { %693 = vperm.xlu1 %3184, %v670_v3   ;;  %690 = vperm.xlu0 %3183, %v669_v19  }
  0x79   : > { %699 = vperm.xlu1 %3184, %v672_v13   ;;  %696 = vperm.xlu0 %3183, %v671_v2  }
  0x7d   : > { %705 = vperm.xlu1 %3184, %v674_v14   ;;  %702 = vperm.xlu0 %3183, %v673_v20  }
  0x81   : > { %711 = vperm.xlu1 %3184, %v676_v16   ;;  %708 = vperm.xlu0 %3183, %v675_v17  }
  0x85   : > { %717 = vperm.xlu1 %3184, %v678_v21   ;;  %714 = vperm.xlu0 %3183, %v677_v22  }
  0x89   : > { %723 = vperm.xlu1 %3184, %v680_v23   ;;  %720 = vperm.xlu0 %3183, %v679_v24   ;;  %v541_v24 = vld [vmem:[#allocation3 + $0x10] sm:$0xff] }
  0x8d   : > { %729 = vperm.xlu1 %3184, %v682_v25   ;;  %726 = vperm.xlu0 %3183, %v681_v26   ;;  %v549_v25 = vld [vmem:[#allocation3 + $0x50] sm:$0xff] }
  0x91   : > { %815 = vperm.xlu1 %3184, %v796_v27   ;;  %812 = vperm.xlu0 %3183, %v3519_v48  }
  0x95   : > { %821 = vperm.xlu1 %3184, %v3526_v51   ;;  %818 = vperm.xlu0 %3183, %v3529_v52  }
  0x99   : > { %827 = vperm.xlu1 %3184, %v3534_v53   ;;  %824 = vperm.xlu0 %3183, %v3537_v54  }
  0x9d   : > { %833 = vperm.xlu1 %3184, %v3542_v55   ;;  %830 = vperm.xlu0 %3183, %v3545_v56  }
  0xa1   : > { %839 = vperm.xlu1 %3184, %v3552_v57   ;;  %836 = vperm.xlu0 %3183, %v3555_v58  }
  0xa5   : > { %845 = vperm.xlu1 %3184, %v3562_v61   ;;  %842 = vperm.xlu0 %3183, %v3565_v62  }
  0xa9   : > { %851 = vperm.xlu1 %3184, %v3570_v63   ;;  %848 = vperm.xlu0 %3183, %v3573_v0  }
  0xad   : > { %857 = vperm.xlu1 %3184, %v3578_v1   ;;  %854 = vperm.xlu0 %3183, %v3581_v4   ;;  %v539_v1 = vld [vmem:[#allocation3] sm:$0xff] }
  0xd0   : > { %v3648_v5 = vpop.permute.xlu1 %578  ;;  %v573_v15 = vpop.permute.xlu0 %572 }
  0xd1   : > { %vm619_vm5 = vcmp.eq.s32.totalorder %v573_v15, 1  ;;  %vm621_vm10 = vcmp.eq.s32.totalorder %v3648_v5, 1 }
  0xd2   : > { %v635_v8 = vsel %vm619_vm5, %v539_v1, 0.0 }
  0xd4   : > { %v3650_v28 = vpop.permute.xlu1 %581  ;;  %v3652_v29 = vpop.permute.xlu0 %575 }
  0xd5   : > { %vm620_vm1 = vcmp.eq.s32.totalorder %v3652_v29, 1  ;;  %vm622_vm2 = vcmp.eq.s32.totalorder %v3650_v28, 1 }
  0xd6   : > { %v636_v22 = vsel %vm620_vm1, %v540_v9, 0.0  ;;  %v550_v9 = vld [vmem:[#allocation3 + $0x58] sm:$0xff] }
  0xd8   : > { %v3654_v30 = vpop.permute.xlu1 %587  ;;  %v3656_v31 = vpop.permute.xlu0 %584 }
  0xdc   : > { %v3658_v32 = vpop.permute.xlu1 %593  ;;  %v3660_v33 = vpop.permute.xlu0 %590 }
  0xe0   : > { %v600_v34 = vpop.permute.xlu1 %599  ;;  %v597_v35 = vpop.permute.xlu0 %596 }
  0xe1   : > { %vm627_vm15 = vcmp.eq.s32.totalorder %v597_v35, 1  ;;  %vm628_vm6 = vcmp.eq.s32.totalorder %v600_v34, 1 }
  0xe2   : > { %v643_v11 = vsel %vm627_vm15, %v547_v6, 0.0  ;;  %v644_v23 = vsel %vm628_vm6, %v548_v10, 0.0 }
  0xe4   : > { %v3662_v36 = vpop.permute.xlu1 %605  ;;  %v3664_v37 = vpop.permute.xlu0 %602 }
  0xe5   : > { %vm629_vm11 = vcmp.eq.s32.totalorder %v3664_v37, 1  ;;  %vm630_vm3 = vcmp.eq.s32.totalorder %v3662_v36, 1 }
  0xe8   : > { %v3666_v38 = vpop.permute.xlu1 %611  ;;  %v3668_v39 = vpop.permute.xlu0 %608 }
  0xec   : > { %v3670_v40 = vpop.permute.xlu1 %617  ;;  %v3672_v41 = vpop.permute.xlu0 %614 }
  0xf0   : > { %v3674_v42 = vpop.permute.xlu1 %687  ;;  %v685_v43 = vpop.permute.xlu0 %684 }
  0xf1   : > { %vm731_vm7 = vcmp.eq.s32.totalorder %v685_v43, 1  ;;  %vm732_vm12 = vcmp.eq.s32.totalorder %v3674_v42, 1  ;;  %v637_v42 = vsel %vm621_vm10, %v541_v24, 0.0 }
  0xf4   : > { %v3676_v44 = vpop.permute.xlu1 %693  ;;  %v3678_v45 = vpop.permute.xlu0 %690 }
  0xf5   : > { %vm733_vm5 = vcmp.eq.s32.totalorder %v3678_v45, 1 }
  0xf8   : > { %v3680_v46 = vpop.permute.xlu1 %699  ;;  %v3682_v47 = vpop.permute.xlu0 %696 }
  0xfc   : > { %v3684_v48 = vpop.permute.xlu1 %705  ;;  %v3686_v49 = vpop.permute.xlu0 %702 }
 0x100   : > { %v712_v50 = vpop.permute.xlu1 %711  ;;  %v709_v51 = vpop.permute.xlu0 %708 }
 0x101   : > { %vm739_vm8 = vcmp.eq.s32.totalorder %v709_v51, 1  ;;  %vm740_vm13 = vcmp.eq.s32.totalorder %v712_v50, 1  ;;  %v645_v50 = vsel %vm629_vm11, %v549_v25, 0.0 }
 0x104   : > { %v3688_v52 = vpop.permute.xlu1 %717  ;;  %v3690_v53 = vpop.permute.xlu0 %714 }
 0x105   : > { %vm741_vm15 = vcmp.eq.s32.totalorder %v3690_v53, 1 }
 0x108   : > { %v3692_v54 = vpop.permute.xlu1 %723  ;;  %v3694_v55 = vpop.permute.xlu0 %720 }
 0x10c   : > { %v3696_v56 = vpop.permute.xlu0 %726  ;;  %v3698_v57 = vpop.permute.xlu1 %729 }
 0x110   : > { %v813_v58 = vpop.permute.xlu0 %812  ;;  %v816_v59 = vpop.permute.xlu1 %815 }
 0x111   : > { %vm859_vm9 = vcmp.eq.s32.totalorder %v813_v58, 1  ;;  %vm860_vm14 = vcmp.eq.s32.totalorder %v816_v59, 1  ;;  %v542_v59 = vld [vmem:[#allocation3 + $0x18] sm:$0xff] }
 0x112   : > { %v638_v53 = vsel %vm622_vm2, %v542_v59, 0.0 }
 0x114   : > { %v3700_v60 = vpop.permute.xlu0 %818  ;;  %v3702_v61 = vpop.permute.xlu1 %821 }
 0x115   : > { %vm861_vm1 = vcmp.eq.s32.totalorder %v3700_v60, 1  ;;  %v646_v60 = vsel %vm630_vm3, %v550_v9, 0.0  ;;  %vm862_vm10 = vcmp.eq.s32.totalorder %v3702_v61, 1 }
 0x118   : > { %v3704_v62 = vpop.permute.xlu0 %824  ;;  %v3706_v63 = vpop.permute.xlu1 %827 }
 0x119   : > { %vm863_vm2 = vcmp.eq.s32.totalorder %v3704_v62, 1 }
 0x11c   : > { %v3708_v0 = vpop.permute.xlu0 %830  ;;  %v3710_v4 = vpop.permute.xlu1 %833 }
 0x120   : > { %v837_v7 = vpop.permute.xlu0 %836  ;;  %v840_v14 = vpop.permute.xlu1 %839 }
 0x121   : > { %vm867_vm4 = vcmp.eq.s32.totalorder %v837_v7, 1  ;;  %vm868_vm0 = vcmp.eq.s32.totalorder %v840_v14, 1 }
 0x124   : > { %v843_v58 = vpop.permute.xlu0 %842 }
 0x125   : > { %vm869_vm6 = vcmp.eq.s32.totalorder %v843_v58, 1 }
 0x129   : > { %v412_v12 = vpop.f32.mrb[0].mxu0  ;;  %v460_v18 = vpop.f32.mrb[0].mxu1 }
 0x12a   : > { %v747_v3 = vsel %vm731_vm7, %v412_v12, 0.0  ;;  %v755_v19 = vsel %vm739_vm8, %v460_v18, 0.0  ;;  %v414_v13 = vpop.f32.mrb[1].mxu0  ;;  %v462_v2 = vpop.f32.mrb[1].mxu1  ;;  %vm623_vm7 = vcmp.eq.s32.totalorder %v3656_v31, 1  ;;  %vm631_vm8 = vcmp.eq.s32.totalorder %v3668_v39, 1 }
 0x12b   : > { %v763_v20 = vadd.f32 %v747_v3, %v635_v8  ;;  %v771_v16 = vadd.f32 %v755_v19, %v643_v11  ;;  %v875_v17 = vsel %vm859_vm9, %v414_v13, 0.0  ;;  %v883_v21 = vsel %vm867_vm4, %v462_v2, 0.0  ;;  %v846_v13 = vpop.permute.xlu1 %845 }
 0x12c   : > { %vm734_vm9 = vcmp.eq.s32.totalorder %v3676_v44, 1  ;;  %vm742_vm4 = vcmp.eq.s32.totalorder %v3688_v52, 1  ;;  %vm870_vm11 = vcmp.eq.s32.totalorder %v846_v13, 1 }
 0x12d   : > { %v891_v26 = vadd.f32 %v875_v17, %v763_v20  ;;  %v899_v27 = vadd.f32 %v883_v21, %v771_v16  ;;  %v418_v15 = vpop.f32.mrb[2].mxu0  ;;  %v466_v35 = vpop.f32.mrb[2].mxu1  ;;  %v543_v16 = vld [vmem:[#allocation3 + $0x20] sm:$0xff] }
 0x12e   : > { %v748_v43 = vsel %vm732_vm12, %v418_v15, 0.0  ;;  %v756_v29 = vsel %vm740_vm13, %v466_v35, 0.0  ;;  %v420_v51 = vpop.f32.mrb[3].mxu0  ;;  %v468_v34 = vpop.f32.mrb[3].mxu1  ;;  %v551_v17 = vld [vmem:[#allocation3 + $0x60] sm:$0xff]  ;;  %vm624_vm12 = vcmp.eq.s32.totalorder %v3654_v30, 1 }
 0x12f   : > { %907 = vst [vmem:[%s3401_s25] sm:$0xff] %v891_v26  ;;  %915 = vst [vmem:[%s3401_s25 + $0x40] sm:$0xff] %v899_v27  ;;  %v764_v1 = vadd.f32 %v748_v43, %v636_v22  ;;  %v772_v6 = vadd.f32 %v756_v29, %v644_v23  ;;  %v876_v7 = vsel %vm860_vm14, %v420_v51, 0.0  ;;  %v884_v8 = vsel %vm868_vm0, %v468_v34, 0.0  ;;  %v849_v27 = vpop.permute.xlu0 %848  ;;  %v544_v29 = vld [vmem:[#allocation3 + $0x28] sm:$0xff] }
 0x130   : > { %v639_v52 = vsel %vm623_vm7, %v543_v16, 0.0  ;;  %vm632_vm13 = vcmp.eq.s32.totalorder %v3666_v38, 1  ;;  %v647_v61 = vsel %vm631_vm8, %v551_v17, 0.0  ;;  %v552_v51 = vld [vmem:[#allocation3 + $0x68] sm:$0xff]  ;;  %vm735_vm14 = vcmp.eq.s32.totalorder %v3682_v47, 1 }
 0x131   : > { %v892_v10 = vadd.f32 %v876_v7, %v764_v1  ;;  %v900_v11 = vadd.f32 %v884_v8, %v772_v6  ;;  %v424_v12 = vpop.f32.mrb[4].mxu0  ;;  %v472_v5 = vpop.f32.mrb[4].mxu1  ;;  %vm743_vm0 = vcmp.eq.s32.totalorder %v3694_v55, 1  ;;  %vm871_vm3 = vcmp.eq.s32.totalorder %v849_v27, 1 }
 0x132   : > { %v749_v18 = vsel %vm733_vm5, %v424_v12, 0.0  ;;  %v757_v3 = vsel %vm741_vm15, %v472_v5, 0.0  ;;  %v426_v19 = vpop.f32.mrb[5].mxu0  ;;  %v474_v37 = vpop.f32.mrb[5].mxu1  ;;  %v640_v55 = vsel %vm624_vm12, %v544_v29, 0.0  ;;  %vm625_vm5 = vcmp.eq.s32.totalorder %v3660_v33, 1 }
 0x133   : > { %908 = vst [vmem:[%s3401_s25 + $0x8] sm:$0xff] %v892_v10  ;;  %916 = vst [vmem:[%s3401_s25 + $0x48] sm:$0xff] %v900_v11  ;;  %v765_v2 = vadd.f32 %v749_v18, %v637_v42  ;;  %v773_v14 = vadd.f32 %v757_v3, %v645_v50  ;;  %v877_v20 = vsel %vm861_vm1, %v426_v19, 0.0  ;;  %v885_v45 = vsel %vm869_vm6, %v474_v37, 0.0  ;;  %v852_v42 = vpop.permute.xlu1 %851  ;;  %v545_v10 = vld [vmem:[#allocation3 + $0x30] sm:$0xff]  ;;  %v855_v13 = vpop.permute.xlu0 %854 }
 0x134   : > { %v648_v62 = vsel %vm632_vm13, %v552_v51, 0.0  ;;  %vm633_vm15 = vcmp.eq.s32.totalorder %v3672_v41, 1  ;;  %v553_v11 = vld [vmem:[#allocation3 + $0x70] sm:$0xff]  ;;  %vm736_vm1 = vcmp.eq.s32.totalorder %v3680_v46, 1  ;;  %vm744_vm6 = vcmp.eq.s32.totalorder %v3692_v54, 1 }
 0x135   : > { %v893_v21 = vadd.f32 %v877_v20, %v765_v2  ;;  %v901_v22 = vadd.f32 %v885_v45, %v773_v14  ;;  %v430_v23 = vpop.f32.mrb[6].mxu0  ;;  %v478_v28 = vpop.f32.mrb[6].mxu1  ;;  %vm864_vm7 = vcmp.eq.s32.totalorder %v3706_v63, 1  ;;  %vm872_vm8 = vcmp.eq.s32.totalorder %v852_v42, 1  ;;  %v546_v45 = vld [vmem:[#allocation3 + $0x38] sm:$0xff] }
 0x136   : > { %v750_v24 = vsel %vm734_vm9, %v430_v23, 0.0  ;;  %v758_v36 = vsel %vm742_vm4, %v478_v28, 0.0  ;;  %v432_v25 = vpop.f32.mrb[7].mxu0  ;;  %v480_v26 = vpop.f32.mrb[7].mxu1  ;;  %vm626_vm9 = vcmp.eq.s32.totalorder %v3658_v32, 1  ;;  %v641_v54 = vsel %vm625_vm5, %v545_v10, 0.0 }
 0x137   : > { %909 = vst [vmem:[%s3401_s25 + $0x10] sm:$0xff] %v893_v21  ;;  %917 = vst [vmem:[%s3401_s25 + $0x50] sm:$0xff] %v901_v22  ;;  %v766_v15 = vadd.f32 %v750_v24, %v638_v53  ;;  %v774_v35 = vadd.f32 %v758_v36, %v646_v60  ;;  %v878_v43 = vsel %vm862_vm10, %v432_v25, 0.0  ;;  %v886_v44 = vsel %vm870_vm11, %v480_v26, 0.0  ;;  %v554_v53 = vld [vmem:[#allocation3 + $0x78] sm:$0xff]  ;;  %v858_v28 = vpop.permute.xlu1 %857 }
 0x138   : > { %vm634_vm4 = vcmp.eq.s32.totalorder %v3670_v40, 1  ;;  %v649_v63 = vsel %vm633_vm15, %v553_v11, 0.0  ;;  %vm737_vm10 = vcmp.eq.s32.totalorder %v3686_v49, 1  ;;  %vm745_vm11 = vcmp.eq.s32.totalorder %v3696_v56, 1 }
 0x139   : > { %v894_v34 = vadd.f32 %v878_v43, %v766_v15  ;;  %v902_v58 = vadd.f32 %v886_v44, %v774_v35  ;;  %v436_v1 = vpop.f32.mrb[8].mxu0  ;;  %v484_v6 = vpop.f32.mrb[8].mxu1  ;;  %vm865_vm12 = vcmp.eq.s32.totalorder %v3708_v0, 1  ;;  %vm873_vm13 = vcmp.eq.s32.totalorder %v855_v13, 1 }
 0x13a   : > { %v751_v31 = vsel %vm735_vm14, %v436_v1, 0.0  ;;  %v759_v7 = vsel %vm743_vm0, %v484_v6, 0.0  ;;  %v438_v8 = vpop.f32.mrb[9].mxu0  ;;  %v486_v39 = vpop.f32.mrb[9].mxu1  ;;  %v642_v25 = vsel %vm626_vm9, %v546_v45, 0.0  ;;  %v650_v0 = vsel %vm634_vm4, %v554_v53, 0.0 }
 0x13b   : > { %910 = vst [vmem:[%s3401_s25 + $0x18] sm:$0xff] %v894_v34  ;;  %918 = vst [vmem:[%s3401_s25 + $0x58] sm:$0xff] %v902_v58  ;;  %v767_v50 = vadd.f32 %v751_v31, %v639_v52  ;;  %v775_v59 = vadd.f32 %v759_v7, %v647_v61  ;;  %v879_v9 = vsel %vm863_vm2, %v438_v8, 0.0  ;;  %v887_v47 = vsel %vm871_vm3, %v486_v39, 0.0 }
 0x13c   : > { %vm738_vm14 = vcmp.eq.s32.totalorder %v3684_v48, 1  ;;  %vm746_vm0 = vcmp.eq.s32.totalorder %v3698_v57, 1  ;;  %vm866_vm2 = vcmp.eq.s32.totalorder %v3710_v4, 1  ;;  %vm874_vm3 = vcmp.eq.s32.totalorder %v858_v28, 1 }
 0x13d   : > { %v895_v12 = vadd.f32 %v879_v9, %v767_v50  ;;  %v903_v5 = vadd.f32 %v887_v47, %v775_v59  ;;  %v442_v18 = vpop.f32.mrb[10].mxu0  ;;  %v490_v30 = vpop.f32.mrb[10].mxu1 }
 0x13e   : > { %v752_v3 = vsel %vm736_vm1, %v442_v18, 0.0  ;;  %v760_v38 = vsel %vm744_vm6, %v490_v30, 0.0  ;;  %v444_v19 = vpop.f32.mrb[11].mxu0  ;;  %v492_v37 = vpop.f32.mrb[11].mxu1 }
 0x13f   : > { %911 = vst [vmem:[%s3401_s25 + $0x20] sm:$0xff] %v895_v12  ;;  %919 = vst [vmem:[%s3401_s25 + $0x60] sm:$0xff] %v903_v5  ;;  %v768_v2 = vadd.f32 %v752_v3, %v640_v55  ;;  %v776_v14 = vadd.f32 %v760_v38, %v648_v62  ;;  %v880_v20 = vsel %vm864_vm7, %v444_v19, 0.0  ;;  %v888_v46 = vsel %vm872_vm8, %v492_v37, 0.0 }
 0x141   : > { %v896_v60 = vadd.f32 %v880_v20, %v768_v2  ;;  %v904_v16 = vadd.f32 %v888_v46, %v776_v14  ;;  %v448_v17 = vpop.f32.mrb[12].mxu0  ;;  %v496_v21 = vpop.f32.mrb[12].mxu1 }
 0x142   : > { %v753_v33 = vsel %vm737_vm10, %v448_v17, 0.0  ;;  %v761_v22 = vsel %vm745_vm11, %v496_v21, 0.0  ;;  %v450_v23 = vpop.f32.mrb[13].mxu0  ;;  %v498_v41 = vpop.f32.mrb[13].mxu1 }
 0x143   : > { %912 = vst [vmem:[%s3401_s25 + $0x28] sm:$0xff] %v896_v60  ;;  %920 = vst [vmem:[%s3401_s25 + $0x68] sm:$0xff] %v904_v16  ;;  %v769_v24 = vadd.f32 %v753_v33, %v641_v54  ;;  %v777_v49 = vadd.f32 %v761_v22, %v649_v63  ;;  %v881_v36 = vsel %vm865_vm12, %v450_v23, 0.0  ;;  %v889_v56 = vsel %vm873_vm13, %v498_v41, 0.0 }
 0x145   : > { %v897_v26 = vadd.f32 %v881_v36, %v769_v24  ;;  %v905_v27 = vadd.f32 %v889_v56, %v777_v49  ;;  %v454_v15 = vpop.f32.mrb[14].mxu0  ;;  %v502_v35 = vpop.f32.mrb[14].mxu1 }
 0x146   : > { %v754_v32 = vsel %vm738_vm14, %v454_v15, 0.0  ;;  %v762_v40 = vsel %vm746_vm0, %v502_v35, 0.0  ;;  %v456_v43 = vpop.f32.mrb[15].mxu0  ;;  %v504_v44 = vpop.f32.mrb[15].mxu1 }
 0x147   : > { %913 = vst [vmem:[%s3401_s25 + $0x30] sm:$0xff] %v897_v26  ;;  %921 = vst [vmem:[%s3401_s25 + $0x70] sm:$0xff] %v905_v27  ;;  %v770_v48 = vadd.f32 %v754_v32, %v642_v25  ;;  %v778_v57 = vadd.f32 %v762_v40, %v650_v0  ;;  %v882_v52 = vsel %vm866_vm2, %v456_v43, 0.0  ;;  %v890_v61 = vsel %vm874_vm3, %v504_v44, 0.0 }
 0x149   : > { %v898_v4 = vadd.f32 %v882_v52, %v770_v48  ;;  %v906_v29 = vadd.f32 %v890_v61, %v778_v57 }
 0x14b   : > { %914 = vst [vmem:[%s3401_s25 + $0x38] sm:$0xff] %v898_v4  ;;  %922 = vst [vmem:[%s3401_s25 + $0x78] sm:$0xff] %v906_v29 }
 0x14c   : > { %3222 = shalt.err (!%p3219_p3)
}
 0x14d   : > { %s3223_s25 = scalar_lea.hbm %s3790_s19, 2048  ;;  %s3227_s10 = scalar_lea.hbm %s3844_s6, 4096 }
 0x14e   : > { %p3224_p4 = scmp.ne.s32.totalorder %s3790_s19, %s3223_s25  ;;  %p3228_p7 = scmp.lt.u32.totalorder %s3790_s19, %s3844_s6 }
 0x14f   : > { %p3229_p8 = scmp.lt.u32.totalorder %s3227_s10, %s3223_s25  ;;  %p3231_p10 = scmp.lt.u32.totalorder %s3223_s25, %s3790_s19 }
 0x150   : > { %p3225_p5 = pnand %p3224_p4, %p3381_p1 }
 0x151   : > { %p3230_p9 = por %p3229_p8, %p3228_p7 }
 0x152   : > { %p3226_p6 = pneg %p3225_p5 }
 0x153   : > { %p3232_p11 = por %p3231_p10, %p3230_p9 }
 0x155   : > { %p3233_p12 = pnand %p3232_p11, %p3226_p6 }
 0x157   : > { %3236 = shalt.err (!%p3233_p12)
}
 0x158   : > { %s3300_s18 = smov 128   ;;  %s3301_s24 = smov 8  }
 0x159   : > { %3122 = dma.vmem_to_hbm [thread:$0]  (%p3381_p1), %s3792_s21, 2048, %s3790_s19, %s3798_s27, %s3300_s18, %s3300_s18, %s3301_s24  }
 0x15a PF: > { %p3128_p13 = scmp.ge.s32.totalorder %s3285_s8, 2  ;;  %s952_s22 = sand.u32 1, %s3273_s1  }
 0x15b   : > { %s953_s9 = scalar_lea.sflag [#allocation9], %s952_s22 }
 0x15c   : > { %p3125_p0 = pnand %p3128_p13, %p3385_p2 }
 0x15e   : > { %3268 = dma.done.wait (!%p3125_p0), %s953_s9, 2048  }
 0x15f   : > { %3270 = vsyncadd (!%p3125_p0), %s953_s9, 4294965248  ;;  %p26_p3 = scmp.ge.s32.totalorder %s3368_s11, 4   ;;  %s3850_s1 = smov %s3277_s30 }
 0x160   : > { %s3851_s30 = smov %s3281_s7  ;;  %s3852_s7 = smov %s3379_s14 }
 0x161   : > { %s3853_s8 = smov %s3368_s11  ;;  %28 = sbr.rel (!%p26_p3) target bundleno = 28 (0x1c), region = 442 }
 0x168   :  { %958 = vsyncpa [#allocation9], 1 }
 0x169   :  { %960 = vsyncpa [#allocation9 + $0x1], 1 }
 0x16a   :  { %961 = vsyncmov [#allocation4] }
 0x16d   :  { %s962_s8 = vpop.sfrf %961 }
 0x16e   :  { %p2859_p1 = scmp.ne.s32.totalorder %s962_s8, 0 }
 0x170   :  { %966 = shalt.err (%p2859_p1)  }
 0x171   :  { %968 = vsyncmov [#allocation4 + $0x1] }
 0x174   :  { %s969_s15 = vpop.sfrf %968 }
 0x175   :  { %p2860_p2 = scmp.ne.s32.totalorder %s969_s15, 0 }
 0x177   :  { %973 = shalt.err (%p2860_p2)  }
 0x178   :  { %975 = vsyncmov [#allocation4 + $0x2] }
 0x17b   :  { %s976_s16 = vpop.sfrf %975 }
 0x17c   :  { %p2861_p4 = scmp.ne.s32.totalorder %s976_s16, 0 }
 0x17e   :  { %980 = shalt.err (%p2861_p4)  }
 0x17f   :  { %982 = vsyncmov [#allocation4 + $0x3] }
 0x182   :  { %s983_s21 = vpop.sfrf %982 }
 0x183   :  { %p2862_p5 = scmp.ne.s32.totalorder %s983_s21, 0 }
 0x185   :  { %987 = shalt.err (%p2862_p5)  }
 0x186   :  { %989 = vsyncmov [#allocation4 + $0x4] }
 0x189   :  { %s990_s11 = vpop.sfrf %989 }
 0x18a   :  { %p2863_p6 = scmp.ne.s32.totalorder %s990_s11, 0 }
 0x18c   :  { %994 = shalt.err (%p2863_p6)  }
 0x18d   :  { %996 = vsyncmov [#allocation4 + $0x5] }
 0x190   :  { %s997_s2 = vpop.sfrf %996 }
 0x191   :  { %p2864_p7 = scmp.ne.s32.totalorder %s997_s2, 0 }
 0x193   :  { %1001 = shalt.err (%p2864_p7)  }
 0x194   :  { %1003 = vsyncmov [#allocation4 + $0x6] }
 0x197   :  { %s1004_s3 = vpop.sfrf %1003 }
 0x198   :  { %p2865_p8 = scmp.ne.s32.totalorder %s1004_s3, 0 }
 0x19a   :  { %1008 = shalt.err (%p2865_p8)  }
 0x19b   :  { %1010 = vsyncmov [#allocation4 + $0x7] }
 0x19e   :  { %s1011_s4 = vpop.sfrf %1010 }
 0x19f   :  { %p2866_p9 = scmp.ne.s32.totalorder %s1011_s4, 0 }
 0x1a1   :  { %1015 = shalt.err (%p2866_p9)  }
 0x1a2   :  { %1017 = vsyncmov [#allocation4 + $0x8] }
 0x1a5   :  { %s1018_s5 = vpop.sfrf %1017 }
 0x1a6   :  { %p2867_p10 = scmp.ne.s32.totalorder %s1018_s5, 0 }
 0x1a8   :  { %1022 = shalt.err (%p2867_p10)  }
 0x1a9   :  { %1024 = vsyncmov [#allocation4 + $0x9] }
 0x1ac   :  { %s1025_s6 = vpop.sfrf %1024 }
 0x1ad   :  { %p2868_p11 = scmp.ne.s32.totalorder %s1025_s6, 0 }
 0x1af   :  { %1029 = shalt.err (%p2868_p11)  }
 0x1b0   :  { %1031 = vsyncmov [#allocation4 + $0xa] }
 0x1b3   :  { %s1032_s1 = vpop.sfrf %1031 }
 0x1b4   :  { %p2869_p12 = scmp.ne.s32.totalorder %s1032_s1, 0 }
 0x1b6   :  { %1036 = shalt.err (%p2869_p12)  }
 0x1b7   :  { %1038 = vsyncmov [#allocation4 + $0xb] }
 0x1ba   :  { %s1039_s30 = vpop.sfrf %1038 }
 0x1bb   :  { %p2870_p13 = scmp.ne.s32.totalorder %s1039_s30, 0 }
 0x1bd   :  { %1043 = shalt.err (%p2870_p13)  }
 0x1be   :  { %1045 = vsyncmov [#allocation4 + $0xc] }
 0x1c1   :  { %s1046_s7 = vpop.sfrf %1045 }
 0x1c2   :  { %p2871_p0 = scmp.ne.s32.totalorder %s1046_s7, 0 }
 0x1c4   :  { %1050 = shalt.err (%p2871_p0)  }
 0x1c5   :  { %1052 = vsyncmov [#allocation4 + $0xd] }
 0x1c8   :  { %s1053_s14 = vpop.sfrf %1052 }
 0x1c9   :  { %p2872_p3 = scmp.ne.s32.totalorder %s1053_s14, 0 }
 0x1cb   :  { %1057 = shalt.err (%p2872_p3)  }
 0x1cc   :  { %1059 = vsyncmov [#allocation4 + $0xe] }
 0x1cf   :  { %s1060_s19 = vpop.sfrf %1059 }
 0x1d0   :  { %p2873_p1 = scmp.ne.s32.totalorder %s1060_s19, 0 }
 0x1d2   :  { %1064 = shalt.err (%p2873_p1)  }
 0x1d3   :  { %1066 = vsyncmov [#allocation4 + $0xf] }
 0x1d6   :  { %s1067_s23 = vpop.sfrf %1066 }
 0x1d7   :  { %p2874_p2 = scmp.ne.s32.totalorder %s1067_s23, 0 }
 0x1d9   :  { %1071 = shalt.err (%p2874_p2)  }
 0x1da   :  { %1073 = vsyncmov [#allocation4 + $0x10] }
 0x1dd   :  { %s1074_s27 = vpop.sfrf %1073 }
 0x1de   :  { %p2875_p4 = scmp.ne.s32.totalorder %s1074_s27, 0 }
 0x1e0   :  { %1078 = shalt.err (%p2875_p4)  }
 0x1e1   :  { %1080 = vsyncmov [#allocation4 + $0x11] }
 0x1e4   :  { %s1081_s28 = vpop.sfrf %1080 }
 0x1e5   :  { %p2876_p5 = scmp.ne.s32.totalorder %s1081_s28, 0 }
 0x1e7   :  { %1085 = shalt.err (%p2876_p5)  }
 0x1e8   :  { %1087 = vsyncmov [#allocation4 + $0x12] }
 0x1eb   :  { %s1088_s0 = vpop.sfrf %1087 }
 0x1ec   :  { %p2877_p6 = scmp.ne.s32.totalorder %s1088_s0, 0 }
 0x1ee   :  { %1092 = shalt.err (%p2877_p6)  }
 0x1ef   :  { %1094 = vsyncmov [#allocation4 + $0x13] }
 0x1f2   :  { %s1095_s17 = vpop.sfrf %1094 }
 0x1f3   :  { %p2878_p7 = scmp.ne.s32.totalorder %s1095_s17, 0 }
 0x1f5   :  { %1099 = shalt.err (%p2878_p7)  }
 0x1f6   :  { %1101 = vsyncmov [#allocation4 + $0x14] }
 0x1f9   :  { %s1102_s20 = vpop.sfrf %1101 }
 0x1fa   :  { %p2879_p8 = scmp.ne.s32.totalorder %s1102_s20, 0 }
 0x1fc   :  { %1106 = shalt.err (%p2879_p8)  }
 0x1fd   :  { %1108 = vsyncmov [#allocation4 + $0x15] }
 0x200   :  { %s1109_s25 = vpop.sfrf %1108 }
 0x201   :  { %p2880_p9 = scmp.ne.s32.totalorder %s1109_s25, 0 }
 0x203   :  { %1113 = shalt.err (%p2880_p9)  }
 0x204   :  { %1115 = vsyncmov [#allocation4 + $0x16] }
 0x207   :  { %s1116_s26 = vpop.sfrf %1115 }
 0x208   :  { %p2881_p10 = scmp.ne.s32.totalorder %s1116_s26, 0 }
 0x20a   :  { %1120 = shalt.err (%p2881_p10)  }
 0x20b   :  { %1122 = vsyncmov [#allocation4 + $0x17] }
 0x20e   :  { %s1123_s29 = vpop.sfrf %1122 }
 0x20f   :  { %p2882_p11 = scmp.ne.s32.totalorder %s1123_s29, 0 }
 0x211   :  { %1127 = shalt.err (%p2882_p11)  }
 0x212   :  { %1129 = vsyncmov [#allocation4 + $0x18] }
 0x215   :  { %s1130_s10 = vpop.sfrf %1129 }
 0x216   :  { %p2883_p12 = scmp.ne.s32.totalorder %s1130_s10, 0 }
 0x218   :  { %1134 = shalt.err (%p2883_p12)  }
 0x219   :  { %1136 = vsyncmov [#allocation4 + $0x19] }
 0x21c   :  { %s1137_s12 = vpop.sfrf %1136 }
 0x21d   :  { %p2884_p13 = scmp.ne.s32.totalorder %s1137_s12, 0 }
 0x21f   :  { %1141 = shalt.err (%p2884_p13)  }
 0x220   :  { %1143 = vsyncmov [#allocation4 + $0x1a] }
 0x223   :  { %s1144_s13 = vpop.sfrf %1143 }
 0x224   :  { %p2885_p0 = scmp.ne.s32.totalorder %s1144_s13, 0 }
 0x226   :  { %1148 = shalt.err (%p2885_p0)  }
 0x227   :  { %1150 = vsyncmov [#allocation4 + $0x1b] }
 0x22a   :  { %s1151_s18 = vpop.sfrf %1150 }
 0x22b   :  { %p2886_p3 = scmp.ne.s32.totalorder %s1151_s18, 0 }
 0x22d   :  { %1155 = shalt.err (%p2886_p3)  }
 0x22e   :  { %1157 = vsyncmov [#allocation4 + $0x1c] }
 0x231   :  { %s1158_s24 = vpop.sfrf %1157 }
 0x232   :  { %p2887_p1 = scmp.ne.s32.totalorder %s1158_s24, 0 }
 0x234   :  { %1162 = shalt.err (%p2887_p1)  }
 0x235   :  { %1164 = vsyncmov [#allocation4 + $0x1d] }
 0x238   :  { %s1165_s22 = vpop.sfrf %1164 }
 0x239   :  { %p2888_p2 = scmp.ne.s32.totalorder %s1165_s22, 0 }
 0x23b   :  { %1169 = shalt.err (%p2888_p2)  }
 0x23c   :  { %1171 = vsyncmov [#allocation4 + $0x1e] }
 0x23f   :  { %s1172_s9 = vpop.sfrf %1171 }
 0x240   :  { %p2889_p4 = scmp.ne.s32.totalorder %s1172_s9, 0 }
 0x242   :  { %1176 = shalt.err (%p2889_p4)  }
 0x243   :  { %1178 = vsyncmov [#allocation4 + $0x1f] }
 0x246   :  { %s1179_s8 = vpop.sfrf %1178 }
 0x247   :  { %p2890_p5 = scmp.ne.s32.totalorder %s1179_s8, 0 }
 0x249   :  { %1183 = shalt.err (%p2890_p5)  }
 0x24a   :  { %1185 = vsyncmov [#allocation4 + $0x20] }
 0x24d   :  { %s1186_s15 = vpop.sfrf %1185 }
 0x24e   :  { %p2891_p6 = scmp.ne.s32.totalorder %s1186_s15, 0 }
 0x250   :  { %1190 = shalt.err (%p2891_p6)  }
 0x251   :  { %1192 = vsyncmov [#allocation4 + $0x21] }
 0x254   :  { %s1193_s16 = vpop.sfrf %1192 }
 0x255   :  { %p2892_p7 = scmp.ne.s32.totalorder %s1193_s16, 0 }
 0x257   :  { %1197 = shalt.err (%p2892_p7)  }
 0x258   :  { %1199 = vsyncmov [#allocation4 + $0x22] }
 0x25b   :  { %s1200_s21 = vpop.sfrf %1199 }
 0x25c   :  { %p2893_p8 = scmp.ne.s32.totalorder %s1200_s21, 0 }
 0x25e   :  { %1204 = shalt.err (%p2893_p8)  }
 0x25f   :  { %1206 = vsyncmov [#allocation4 + $0x23] }
 0x262   :  { %s1207_s11 = vpop.sfrf %1206 }
 0x263   :  { %p2894_p9 = scmp.ne.s32.totalorder %s1207_s11, 0 }
 0x265   :  { %1211 = shalt.err (%p2894_p9)  }
 0x266   :  { %1213 = vsyncmov [#allocation4 + $0x24] }
 0x269   :  { %s1214_s2 = vpop.sfrf %1213 }
 0x26a   :  { %p2895_p10 = scmp.ne.s32.totalorder %s1214_s2, 0 }
 0x26c   :  { %1218 = shalt.err (%p2895_p10)  }
 0x26d   :  { %1220 = vsyncmov [#allocation4 + $0x25] }
 0x270   :  { %s1221_s3 = vpop.sfrf %1220 }
 0x271   :  { %p2896_p11 = scmp.ne.s32.totalorder %s1221_s3, 0 }
 0x273   :  { %1225 = shalt.err (%p2896_p11)  }
 0x274   :  { %1227 = vsyncmov [#allocation4 + $0x26] }
 0x277   :  { %s1228_s4 = vpop.sfrf %1227 }
 0x278   :  { %p2897_p12 = scmp.ne.s32.totalorder %s1228_s4, 0 }
 0x27a   :  { %1232 = shalt.err (%p2897_p12)  }
 0x27b   :  { %1234 = vsyncmov [#allocation4 + $0x27] }
 0x27e   :  { %s1235_s5 = vpop.sfrf %1234 }
 0x27f   :  { %p2898_p13 = scmp.ne.s32.totalorder %s1235_s5, 0 }
 0x281   :  { %1239 = shalt.err (%p2898_p13)  }
 0x282   :  { %1241 = vsyncmov [#allocation4 + $0x28] }
 0x285   :  { %s1242_s6 = vpop.sfrf %1241 }
 0x286   :  { %p2899_p0 = scmp.ne.s32.totalorder %s1242_s6, 0 }
 0x288   :  { %1246 = shalt.err (%p2899_p0)  }
 0x289   :  { %1248 = vsyncmov [#allocation4 + $0x29] }
 0x28c   :  { %s1249_s1 = vpop.sfrf %1248 }
 0x28d   :  { %p2900_p3 = scmp.ne.s32.totalorder %s1249_s1, 0 }
 0x28f   :  { %1253 = shalt.err (%p2900_p3)  }
 0x290   :  { %1255 = vsyncmov [#allocation4 + $0x2a] }
 0x293   :  { %s1256_s30 = vpop.sfrf %1255 }
 0x294   :  { %p2901_p1 = scmp.ne.s32.totalorder %s1256_s30, 0 }
 0x296   :  { %1260 = shalt.err (%p2901_p1)  }
 0x297   :  { %1262 = vsyncmov [#allocation4 + $0x2b] }
 0x29a   :  { %s1263_s7 = vpop.sfrf %1262 }
 0x29b   :  { %p2902_p2 = scmp.ne.s32.totalorder %s1263_s7, 0 }
 0x29d   :  { %1267 = shalt.err (%p2902_p2)  }
 0x29e   :  { %1269 = vsyncmov [#allocation4 + $0x2c] }
 0x2a1   :  { %s1270_s14 = vpop.sfrf %1269 }
 0x2a2   :  { %p2903_p4 = scmp.ne.s32.totalorder %s1270_s14, 0 }
 0x2a4   :  { %1274 = shalt.err (%p2903_p4)  }
 0x2a5   :  { %1276 = vsyncmov [#allocation4 + $0x2d] }
 0x2a8   :  { %s1277_s19 = vpop.sfrf %1276 }
 0x2a9   :  { %p2904_p5 = scmp.ne.s32.totalorder %s1277_s19, 0 }
 0x2ab   :  { %1281 = shalt.err (%p2904_p5)  }
 0x2ac   :  { %1283 = vsyncmov [#allocation4 + $0x2e] }
 0x2af   :  { %s1284_s23 = vpop.sfrf %1283 }
 0x2b0   :  { %p2905_p6 = scmp.ne.s32.totalorder %s1284_s23, 0 }
 0x2b2   :  { %1288 = shalt.err (%p2905_p6)  }
 0x2b3   :  { %1290 = vsyncmov [#allocation4 + $0x2f] }
 0x2b6   :  { %s1291_s27 = vpop.sfrf %1290 }
 0x2b7   :  { %p2906_p7 = scmp.ne.s32.totalorder %s1291_s27, 0 }
 0x2b9   :  { %1295 = shalt.err (%p2906_p7)  }
 0x2ba   :  { %1297 = vsyncmov [#allocation4 + $0x30] }
 0x2bd   :  { %s1298_s28 = vpop.sfrf %1297 }
 0x2be   :  { %p2907_p8 = scmp.ne.s32.totalorder %s1298_s28, 0 }
 0x2c0   :  { %1302 = shalt.err (%p2907_p8)  }
 0x2c1   :  { %1304 = vsyncmov [#allocation4 + $0x31] }
 0x2c4   :  { %s1305_s0 = vpop.sfrf %1304 }
 0x2c5   :  { %p2908_p9 = scmp.ne.s32.totalorder %s1305_s0, 0 }
 0x2c7   :  { %1309 = shalt.err (%p2908_p9)  }
 0x2c8   :  { %1311 = vsyncmov [#allocation4 + $0x32] }
 0x2cb   :  { %s1312_s17 = vpop.sfrf %1311 }
 0x2cc   :  { %p2909_p10 = scmp.ne.s32.totalorder %s1312_s17, 0 }
 0x2ce   :  { %1316 = shalt.err (%p2909_p10)  }
 0x2cf   :  { %1318 = vsyncmov [#allocation4 + $0x33] }
 0x2d2   :  { %s1319_s20 = vpop.sfrf %1318 }
 0x2d3   :  { %p2910_p11 = scmp.ne.s32.totalorder %s1319_s20, 0 }
 0x2d5   :  { %1323 = shalt.err (%p2910_p11)  }
 0x2d6   :  { %1325 = vsyncmov [#allocation4 + $0x34] }
 0x2d9   :  { %s1326_s25 = vpop.sfrf %1325 }
 0x2da   :  { %p2911_p12 = scmp.ne.s32.totalorder %s1326_s25, 0 }
 0x2dc   :  { %1330 = shalt.err (%p2911_p12)  }
 0x2dd   :  { %1332 = vsyncmov [#allocation4 + $0x35] }
 0x2e0   :  { %s1333_s26 = vpop.sfrf %1332 }
 0x2e1   :  { %p2912_p13 = scmp.ne.s32.totalorder %s1333_s26, 0 }
 0x2e3   :  { %1337 = shalt.err (%p2912_p13)  }
 0x2e4   :  { %1339 = vsyncmov [#allocation4 + $0x36] }
 0x2e7   :  { %s1340_s29 = vpop.sfrf %1339 }
 0x2e8   :  { %p2913_p0 = scmp.ne.s32.totalorder %s1340_s29, 0 }
 0x2ea   :  { %1344 = shalt.err (%p2913_p0)  }
 0x2eb   :  { %1346 = vsyncmov [#allocation4 + $0x37] }
 0x2ee   :  { %s1347_s10 = vpop.sfrf %1346 }
 0x2ef   :  { %p2914_p3 = scmp.ne.s32.totalorder %s1347_s10, 0 }
 0x2f1   :  { %1351 = shalt.err (%p2914_p3)  }
 0x2f2   :  { %1353 = vsyncmov [#allocation4 + $0x38] }
 0x2f5   :  { %s1354_s12 = vpop.sfrf %1353 }
 0x2f6   :  { %p2915_p1 = scmp.ne.s32.totalorder %s1354_s12, 0 }
 0x2f8   :  { %1358 = shalt.err (%p2915_p1)  }
 0x2f9   :  { %1360 = vsyncmov [#allocation4 + $0x39] }
 0x2fc   :  { %s1361_s13 = vpop.sfrf %1360 }
 0x2fd   :  { %p2916_p2 = scmp.ne.s32.totalorder %s1361_s13, 0 }
 0x2ff   :  { %1365 = shalt.err (%p2916_p2)  }
 0x300   :  { %1367 = vsyncmov [#allocation4 + $0x3a] }
 0x303   :  { %s1368_s18 = vpop.sfrf %1367 }
 0x304   :  { %p2917_p4 = scmp.ne.s32.totalorder %s1368_s18, 0 }
 0x306   :  { %1372 = shalt.err (%p2917_p4)  }
 0x307   :  { %1374 = vsyncmov [#allocation4 + $0x3b] }
 0x30a   :  { %s1375_s24 = vpop.sfrf %1374 }
 0x30b   :  { %p2918_p5 = scmp.ne.s32.totalorder %s1375_s24, 0 }
 0x30d   :  { %1379 = shalt.err (%p2918_p5)  }
 0x30e   :  { %1381 = vsyncmov [#allocation4 + $0x3c] }
 0x311   :  { %s1382_s22 = vpop.sfrf %1381 }
 0x312   :  { %p2919_p6 = scmp.ne.s32.totalorder %s1382_s22, 0 }
 0x314   :  { %1386 = shalt.err (%p2919_p6)  }
 0x315   :  { %1388 = vsyncmov [#allocation4 + $0x3d] }
 0x318   :  { %s1389_s9 = vpop.sfrf %1388 }
 0x319   :  { %p2920_p7 = scmp.ne.s32.totalorder %s1389_s9, 0 }
 0x31b   :  { %1393 = shalt.err (%p2920_p7)  }
 0x31c   :  { %1395 = vsyncmov [#allocation4 + $0x3e] }
 0x31f   :  { %s1396_s8 = vpop.sfrf %1395 }
 0x320   :  { %p2921_p8 = scmp.ne.s32.totalorder %s1396_s8, 0 }
 0x322   :  { %1400 = shalt.err (%p2921_p8)  }
 0x323   :  { %1402 = vsyncmov [#allocation4 + $0x3f] }
 0x326   :  { %s1403_s15 = vpop.sfrf %1402 }
 0x327   :  { %p2922_p9 = scmp.ne.s32.totalorder %s1403_s15, 0 }
 0x329   :  { %1407 = shalt.err (%p2922_p9)  }
 0x32a   :  { %1409 = vsyncmov [#allocation4 + $0x40] }
 0x32d   :  { %s1410_s16 = vpop.sfrf %1409 }
 0x32e   :  { %p2923_p10 = scmp.ne.s32.totalorder %s1410_s16, 0 }
 0x330   :  { %1414 = shalt.err (%p2923_p10)  }
 0x331   :  { %1416 = vsyncmov [#allocation4 + $0x41] }
 0x334   :  { %s1417_s21 = vpop.sfrf %1416 }
 0x335   :  { %p2924_p11 = scmp.ne.s32.totalorder %s1417_s21, 0 }
 0x337   :  { %1421 = shalt.err (%p2924_p11)  }
 0x338   :  { %1423 = vsyncmov [#allocation4 + $0x42] }
 0x33b   :  { %s1424_s11 = vpop.sfrf %1423 }
 0x33c   :  { %p2925_p12 = scmp.ne.s32.totalorder %s1424_s11, 0 }
 0x33e   :  { %1428 = shalt.err (%p2925_p12)  }
 0x33f   :  { %1430 = vsyncmov [#allocation4 + $0x43] }
 0x342   :  { %s1431_s2 = vpop.sfrf %1430 }
 0x343   :  { %p2926_p13 = scmp.ne.s32.totalorder %s1431_s2, 0 }
 0x345   :  { %1435 = shalt.err (%p2926_p13)  }
 0x346   :  { %1437 = vsyncmov [#allocation4 + $0x44] }
 0x349   :  { %s1438_s3 = vpop.sfrf %1437 }
 0x34a   :  { %p2927_p0 = scmp.ne.s32.totalorder %s1438_s3, 0 }
 0x34c   :  { %1442 = shalt.err (%p2927_p0)  }
 0x34d   :  { %1444 = vsyncmov [#allocation4 + $0x45] }
 0x350   :  { %s1445_s4 = vpop.sfrf %1444 }
 0x351   :  { %p2928_p3 = scmp.ne.s32.totalorder %s1445_s4, 0 }
 0x353   :  { %1449 = shalt.err (%p2928_p3)  }
 0x354   :  { %1451 = vsyncmov [#allocation4 + $0x46] }
 0x357   :  { %s1452_s5 = vpop.sfrf %1451 }
 0x358   :  { %p2929_p1 = scmp.ne.s32.totalorder %s1452_s5, 0 }
 0x35a   :  { %1456 = shalt.err (%p2929_p1)  }
 0x35b   :  { %1458 = vsyncmov [#allocation4 + $0x47] }
 0x35e   :  { %s1459_s6 = vpop.sfrf %1458 }
 0x35f   :  { %p2930_p2 = scmp.ne.s32.totalorder %s1459_s6, 0 }
 0x361   :  { %1463 = shalt.err (%p2930_p2)  }
 0x362   :  { %1465 = vsyncmov [#allocation4 + $0x48] }
 0x365   :  { %s1466_s1 = vpop.sfrf %1465 }
 0x366   :  { %p2931_p4 = scmp.ne.s32.totalorder %s1466_s1, 0 }
 0x368   :  { %1470 = shalt.err (%p2931_p4)  }
 0x369   :  { %1472 = vsyncmov [#allocation4 + $0x49] }
 0x36c   :  { %s1473_s30 = vpop.sfrf %1472 }
 0x36d   :  { %p2932_p5 = scmp.ne.s32.totalorder %s1473_s30, 0 }
 0x36f   :  { %1477 = shalt.err (%p2932_p5)  }
 0x370   :  { %1479 = vsyncmov [#allocation4 + $0x4a] }
 0x373   :  { %s1480_s7 = vpop.sfrf %1479 }
 0x374   :  { %p2933_p6 = scmp.ne.s32.totalorder %s1480_s7, 0 }
 0x376   :  { %1484 = shalt.err (%p2933_p6)  }
 0x377   :  { %1486 = vsyncmov [#allocation4 + $0x4b] }
 0x37a   :  { %s1487_s14 = vpop.sfrf %1486 }
 0x37b   :  { %p2934_p7 = scmp.ne.s32.totalorder %s1487_s14, 0 }
 0x37d   :  { %1491 = shalt.err (%p2934_p7)  }
 0x37e   :  { %1493 = vsyncmov [#allocation4 + $0x4c] }
 0x381   :  { %s1494_s19 = vpop.sfrf %1493 }
 0x382   :  { %p2935_p8 = scmp.ne.s32.totalorder %s1494_s19, 0 }
 0x384   :  { %1498 = shalt.err (%p2935_p8)  }
 0x385   :  { %1500 = vsyncmov [#allocation4 + $0x4d] }
 0x388   :  { %s1501_s23 = vpop.sfrf %1500 }
 0x389   :  { %p2936_p9 = scmp.ne.s32.totalorder %s1501_s23, 0 }
 0x38b   :  { %1505 = shalt.err (%p2936_p9)  }
 0x38c   :  { %1507 = vsyncmov [#allocation4 + $0x4e] }
 0x38f   :  { %s1508_s27 = vpop.sfrf %1507 }
 0x390   :  { %p2937_p10 = scmp.ne.s32.totalorder %s1508_s27, 0 }
 0x392   :  { %1512 = shalt.err (%p2937_p10)  }
 0x393   :  { %1514 = vsyncmov [#allocation4 + $0x4f] }
 0x396   :  { %s1515_s28 = vpop.sfrf %1514 }
 0x397   :  { %p2938_p11 = scmp.ne.s32.totalorder %s1515_s28, 0 }
 0x399   :  { %1519 = shalt.err (%p2938_p11)  }
 0x39a   :  { %1521 = vsyncmov [#allocation4 + $0x50] }
 0x39d   :  { %s1522_s0 = vpop.sfrf %1521 }
 0x39e   :  { %p2939_p12 = scmp.ne.s32.totalorder %s1522_s0, 0 }
 0x3a0   :  { %1526 = shalt.err (%p2939_p12)  }
 0x3a1   :  { %1528 = vsyncmov [#allocation4 + $0x51] }
 0x3a4   :  { %s1529_s17 = vpop.sfrf %1528 }
 0x3a5   :  { %p2940_p13 = scmp.ne.s32.totalorder %s1529_s17, 0 }
 0x3a7   :  { %1533 = shalt.err (%p2940_p13)  }
 0x3a8   :  { %1535 = vsyncmov [#allocation4 + $0x52] }
 0x3ab   :  { %s1536_s20 = vpop.sfrf %1535 }
 0x3ac   :  { %p2941_p0 = scmp.ne.s32.totalorder %s1536_s20, 0 }
 0x3ae   :  { %1540 = shalt.err (%p2941_p0)  }
 0x3af   :  { %1542 = vsyncmov [#allocation4 + $0x53] }
 0x3b2   :  { %s1543_s25 = vpop.sfrf %1542 }
 0x3b3   :  { %p2942_p3 = scmp.ne.s32.totalorder %s1543_s25, 0 }
 0x3b5   :  { %1547 = shalt.err (%p2942_p3)  }
 0x3b6   :  { %1549 = vsyncmov [#allocation4 + $0x54] }
 0x3b9   :  { %s1550_s26 = vpop.sfrf %1549 }
 0x3ba   :  { %p2943_p1 = scmp.ne.s32.totalorder %s1550_s26, 0 }
 0x3bc   :  { %1554 = shalt.err (%p2943_p1)  }
 0x3bd   :  { %1556 = vsyncmov [#allocation4 + $0x55] }
 0x3c0   :  { %s1557_s29 = vpop.sfrf %1556 }
 0x3c1   :  { %p2944_p2 = scmp.ne.s32.totalorder %s1557_s29, 0 }
 0x3c3   :  { %1561 = shalt.err (%p2944_p2)  }
 0x3c4   :  { %1563 = vsyncmov [#allocation4 + $0x56] }
 0x3c7   :  { %s1564_s10 = vpop.sfrf %1563 }
 0x3c8   :  { %p2945_p4 = scmp.ne.s32.totalorder %s1564_s10, 0 }
 0x3ca   :  { %1568 = shalt.err (%p2945_p4)  }
 0x3cb   :  { %1570 = vsyncmov [#allocation4 + $0x57] }
 0x3ce   :  { %s1571_s12 = vpop.sfrf %1570 }
 0x3cf   :  { %p2946_p5 = scmp.ne.s32.totalorder %s1571_s12, 0 }
 0x3d1   :  { %1575 = shalt.err (%p2946_p5)  }
 0x3d2   :  { %1577 = vsyncmov [#allocation4 + $0x58] }
 0x3d5   :  { %s1578_s13 = vpop.sfrf %1577 }
 0x3d6   :  { %p2947_p6 = scmp.ne.s32.totalorder %s1578_s13, 0 }
 0x3d8   :  { %1582 = shalt.err (%p2947_p6)  }
 0x3d9   :  { %1584 = vsyncmov [#allocation4 + $0x59] }
 0x3dc   :  { %s1585_s18 = vpop.sfrf %1584 }
 0x3dd   :  { %p2948_p7 = scmp.ne.s32.totalorder %s1585_s18, 0 }
 0x3df   :  { %1589 = shalt.err (%p2948_p7)  }
 0x3e0   :  { %1591 = vsyncmov [#allocation4 + $0x5a] }
 0x3e3   :  { %s1592_s24 = vpop.sfrf %1591 }
 0x3e4   :  { %p2949_p8 = scmp.ne.s32.totalorder %s1592_s24, 0 }
 0x3e6   :  { %1596 = shalt.err (%p2949_p8)  }
 0x3e7   :  { %1598 = vsyncmov [#allocation4 + $0x5b] }
 0x3ea   :  { %s1599_s22 = vpop.sfrf %1598 }
 0x3eb   :  { %p2950_p9 = scmp.ne.s32.totalorder %s1599_s22, 0 }
 0x3ed   :  { %1603 = shalt.err (%p2950_p9)  }
 0x3ee   :  { %1605 = vsyncmov [#allocation4 + $0x5c] }
 0x3f1   :  { %s1606_s9 = vpop.sfrf %1605 }
 0x3f2   :  { %p2951_p10 = scmp.ne.s32.totalorder %s1606_s9, 0 }
 0x3f4   :  { %1610 = shalt.err (%p2951_p10)  }
 0x3f5   :  { %1612 = vsyncmov [#allocation4 + $0x5d] }
 0x3f8   :  { %s1613_s8 = vpop.sfrf %1612 }
 0x3f9   :  { %p2952_p11 = scmp.ne.s32.totalorder %s1613_s8, 0 }
 0x3fb   :  { %1617 = shalt.err (%p2952_p11)  }
 0x3fc   :  { %1619 = vsyncmov [#allocation4 + $0x5e] }
 0x3ff   :  { %s1620_s15 = vpop.sfrf %1619 }
 0x400   :  { %p2953_p12 = scmp.ne.s32.totalorder %s1620_s15, 0 }
 0x402   :  { %1624 = shalt.err (%p2953_p12)  }
 0x403   :  { %1626 = vsyncmov [#allocation4 + $0x5f] }
 0x406   :  { %s1627_s16 = vpop.sfrf %1626 }
 0x407   :  { %p2954_p13 = scmp.ne.s32.totalorder %s1627_s16, 0 }
 0x409   :  { %1631 = shalt.err (%p2954_p13)  }
 0x40a   :  { %1633 = vsyncmov [#allocation4 + $0x60] }
 0x40d   :  { %s1634_s21 = vpop.sfrf %1633 }
 0x40e   :  { %p2955_p0 = scmp.ne.s32.totalorder %s1634_s21, 0 }
 0x410   :  { %1638 = shalt.err (%p2955_p0)  }
 0x411   :  { %1640 = vsyncmov [#allocation4 + $0x61] }
 0x414   :  { %s1641_s11 = vpop.sfrf %1640 }
 0x415   :  { %p2956_p3 = scmp.ne.s32.totalorder %s1641_s11, 0 }
 0x417   :  { %1645 = shalt.err (%p2956_p3)  }
 0x418   :  { %1647 = vsyncmov [#allocation4 + $0x62] }
 0x41b   :  { %s1648_s2 = vpop.sfrf %1647 }
 0x41c   :  { %p2957_p1 = scmp.ne.s32.totalorder %s1648_s2, 0 }
 0x41e   :  { %1652 = shalt.err (%p2957_p1)  }
 0x41f   :  { %1654 = vsyncmov [#allocation4 + $0x63] }
 0x422   :  { %s1655_s3 = vpop.sfrf %1654 }
 0x423   :  { %p2958_p2 = scmp.ne.s32.totalorder %s1655_s3, 0 }
 0x425   :  { %1659 = shalt.err (%p2958_p2)  }
 0x426   :  { %1661 = vsyncmov [#allocation4 + $0x64] }
 0x429   :  { %s1662_s4 = vpop.sfrf %1661 }
 0x42a   :  { %p2959_p4 = scmp.ne.s32.totalorder %s1662_s4, 0 }
 0x42c   :  { %1666 = shalt.err (%p2959_p4)  }
 0x42d   :  { %1668 = vsyncmov [#allocation4 + $0x65] }
 0x430   :  { %s1669_s5 = vpop.sfrf %1668 }
 0x431   :  { %p2960_p5 = scmp.ne.s32.totalorder %s1669_s5, 0 }
 0x433   :  { %1673 = shalt.err (%p2960_p5)  }
 0x434   :  { %1675 = vsyncmov [#allocation4 + $0x66] }
 0x437   :  { %s1676_s6 = vpop.sfrf %1675 }
 0x438   :  { %p2961_p6 = scmp.ne.s32.totalorder %s1676_s6, 0 }
 0x43a   :  { %1680 = shalt.err (%p2961_p6)  }
 0x43b   :  { %1682 = vsyncmov [#allocation4 + $0x67] }
 0x43e   :  { %s1683_s1 = vpop.sfrf %1682 }
 0x43f   :  { %p2962_p7 = scmp.ne.s32.totalorder %s1683_s1, 0 }
 0x441   :  { %1687 = shalt.err (%p2962_p7)  }
 0x442   :  { %1689 = vsyncmov [#allocation4 + $0x68] }
 0x445   :  { %s1690_s30 = vpop.sfrf %1689 }
 0x446   :  { %p2963_p8 = scmp.ne.s32.totalorder %s1690_s30, 0 }
 0x448   :  { %1694 = shalt.err (%p2963_p8)  }
 0x449   :  { %1696 = vsyncmov [#allocation4 + $0x69] }
 0x44c   :  { %s1697_s7 = vpop.sfrf %1696 }
 0x44d   :  { %p2964_p9 = scmp.ne.s32.totalorder %s1697_s7, 0 }
 0x44f   :  { %1701 = shalt.err (%p2964_p9)  }
 0x450   :  { %1703 = vsyncmov [#allocation4 + $0x6a] }
 0x453   :  { %s1704_s14 = vpop.sfrf %1703 }
 0x454   :  { %p2965_p10 = scmp.ne.s32.totalorder %s1704_s14, 0 }
 0x456   :  { %1708 = shalt.err (%p2965_p10)  }
 0x457   :  { %1710 = vsyncmov [#allocation4 + $0x6b] }
 0x45a   :  { %s1711_s19 = vpop.sfrf %1710 }
 0x45b   :  { %p2966_p11 = scmp.ne.s32.totalorder %s1711_s19, 0 }
 0x45d   :  { %1715 = shalt.err (%p2966_p11)  }
 0x45e   :  { %1717 = vsyncmov [#allocation4 + $0x6c] }
 0x461   :  { %s1718_s23 = vpop.sfrf %1717 }
 0x462   :  { %p2967_p12 = scmp.ne.s32.totalorder %s1718_s23, 0 }
 0x464   :  { %1722 = shalt.err (%p2967_p12)  }
 0x465   :  { %1724 = vsyncmov [#allocation4 + $0x6d] }
 0x468   :  { %s1725_s27 = vpop.sfrf %1724 }
 0x469   :  { %p2968_p13 = scmp.ne.s32.totalorder %s1725_s27, 0 }
 0x46b   :  { %1729 = shalt.err (%p2968_p13)  }
 0x46c   :  { %1731 = vsyncmov [#allocation4 + $0x6e] }
 0x46f   :  { %s1732_s28 = vpop.sfrf %1731 }
 0x470   :  { %p2969_p0 = scmp.ne.s32.totalorder %s1732_s28, 0 }
 0x472   :  { %1736 = shalt.err (%p2969_p0)  }
 0x473   :  { %1738 = vsyncmov [#allocation4 + $0x6f] }
 0x476   :  { %s1739_s0 = vpop.sfrf %1738 }
 0x477   :  { %p2970_p3 = scmp.ne.s32.totalorder %s1739_s0, 0 }
 0x479   :  { %1743 = shalt.err (%p2970_p3)  }
 0x47a   :  { %1745 = vsyncmov [#allocation4 + $0x70] }
 0x47d   :  { %s1746_s17 = vpop.sfrf %1745 }
 0x47e   :  { %p2971_p1 = scmp.ne.s32.totalorder %s1746_s17, 0 }
 0x480   :  { %1750 = shalt.err (%p2971_p1)  }
 0x481   :  { %1752 = vsyncmov [#allocation4 + $0x71] }
 0x484   :  { %s1753_s20 = vpop.sfrf %1752 }
 0x485   :  { %p2972_p2 = scmp.ne.s32.totalorder %s1753_s20, 0 }
 0x487   :  { %1757 = shalt.err (%p2972_p2)  }
 0x488   :  { %1759 = vsyncmov [#allocation4 + $0x72] }
 0x48b   :  { %s1760_s25 = vpop.sfrf %1759 }
 0x48c   :  { %p2973_p4 = scmp.ne.s32.totalorder %s1760_s25, 0 }
 0x48e   :  { %1764 = shalt.err (%p2973_p4)  }
 0x48f   :  { %1766 = vsyncmov [#allocation4 + $0x73] }
 0x492   :  { %s1767_s26 = vpop.sfrf %1766 }
 0x493   :  { %p2974_p5 = scmp.ne.s32.totalorder %s1767_s26, 0 }
 0x495   :  { %1771 = shalt.err (%p2974_p5)  }
 0x496   :  { %1773 = vsyncmov [#allocation4 + $0x74] }
 0x499   :  { %s1774_s29 = vpop.sfrf %1773 }
 0x49a   :  { %p2975_p6 = scmp.ne.s32.totalorder %s1774_s29, 0 }
 0x49c   :  { %1778 = shalt.err (%p2975_p6)  }
 0x49d   :  { %1780 = vsyncmov [#allocation4 + $0x75] }
 0x4a0   :  { %s1781_s10 = vpop.sfrf %1780 }
 0x4a1   :  { %p2976_p7 = scmp.ne.s32.totalorder %s1781_s10, 0 }
 0x4a3   :  { %1785 = shalt.err (%p2976_p7)  }
 0x4a4   :  { %1787 = vsyncmov [#allocation4 + $0x76] }
 0x4a7   :  { %s1788_s12 = vpop.sfrf %1787 }
 0x4a8   :  { %p2977_p8 = scmp.ne.s32.totalorder %s1788_s12, 0 }
 0x4aa   :  { %1792 = shalt.err (%p2977_p8)  }
 0x4ab   :  { %1794 = vsyncmov [#allocation4 + $0x77] }
 0x4ae   :  { %s1795_s13 = vpop.sfrf %1794 }
 0x4af   :  { %p2978_p9 = scmp.ne.s32.totalorder %s1795_s13, 0 }
 0x4b1   :  { %1799 = shalt.err (%p2978_p9)  }
 0x4b2   :  { %1801 = vsyncmov [#allocation4 + $0x78] }
 0x4b5   :  { %s1802_s18 = vpop.sfrf %1801 }
 0x4b6   :  { %p2979_p10 = scmp.ne.s32.totalorder %s1802_s18, 0 }
 0x4b8   :  { %1806 = shalt.err (%p2979_p10)  }
 0x4b9   :  { %1808 = vsyncmov [#allocation4 + $0x79] }
 0x4bc   :  { %s1809_s24 = vpop.sfrf %1808 }
 0x4bd   :  { %p2980_p11 = scmp.ne.s32.totalorder %s1809_s24, 0 }
 0x4bf   :  { %1813 = shalt.err (%p2980_p11)  }
 0x4c0   :  { %1815 = vsyncmov [#allocation4 + $0x7a] }
 0x4c3   :  { %s1816_s22 = vpop.sfrf %1815 }
 0x4c4   :  { %p2981_p12 = scmp.ne.s32.totalorder %s1816_s22, 0 }
 0x4c6   :  { %1820 = shalt.err (%p2981_p12)  }
 0x4c7   :  { %1822 = vsyncmov [#allocation4 + $0x7b] }
 0x4ca   :  { %s1823_s9 = vpop.sfrf %1822 }
 0x4cb   :  { %p2982_p13 = scmp.ne.s32.totalorder %s1823_s9, 0 }
 0x4cd   :  { %1827 = shalt.err (%p2982_p13)  }
 0x4ce   :  { %1829 = vsyncmov [#allocation4 + $0x7c] }
 0x4d1   :  { %s1830_s8 = vpop.sfrf %1829 }
 0x4d2   :  { %p2983_p0 = scmp.ne.s32.totalorder %s1830_s8, 0 }
 0x4d4   :  { %1834 = shalt.err (%p2983_p0)  }
 0x4d5   :  { %1836 = vsyncmov [#allocation4 + $0x7d] }
 0x4d8   :  { %s1837_s15 = vpop.sfrf %1836 }
 0x4d9   :  { %p2984_p3 = scmp.ne.s32.totalorder %s1837_s15, 0 }
 0x4db   :  { %1841 = shalt.err (%p2984_p3)  }
 0x4dc   :  { %1843 = vsyncmov [#allocation4 + $0x7e] }
 0x4df   :  { %s1844_s16 = vpop.sfrf %1843 }
 0x4e0   :  { %p2985_p1 = scmp.ne.s32.totalorder %s1844_s16, 0 }
 0x4e2   :  { %1848 = shalt.err (%p2985_p1)  }
 0x4e3   :  { %1850 = vsyncmov [#allocation4 + $0x7f] }
 0x4e6   :  { %s1851_s21 = vpop.sfrf %1850 }
 0x4e7   :  { %p2986_p2 = scmp.ne.s32.totalorder %s1851_s21, 0 }
 0x4e9   :  { %1855 = shalt.err (%p2986_p2)  }
 0x4ea   :  { %1857 = vsyncmov [#allocation4 + $0x80] }
 0x4ed   :  { %s1858_s11 = vpop.sfrf %1857 }
 0x4ee   :  { %p2987_p4 = scmp.ne.s32.totalorder %s1858_s11, 0 }
 0x4f0   :  { %1862 = shalt.err (%p2987_p4)  }
 0x4f1   :  { %1864 = vsyncmov [#allocation4 + $0x81] }
 0x4f4   :  { %s1865_s2 = vpop.sfrf %1864 }
 0x4f5   :  { %p2988_p5 = scmp.ne.s32.totalorder %s1865_s2, 0 }
 0x4f7   :  { %1869 = shalt.err (%p2988_p5)  }
 0x4f8   :  { %1871 = vsyncmov [#allocation4 + $0x82] }
 0x4fb   :  { %s1872_s3 = vpop.sfrf %1871 }
 0x4fc   :  { %p2989_p6 = scmp.ne.s32.totalorder %s1872_s3, 0 }
 0x4fe   :  { %1876 = shalt.err (%p2989_p6)  }
 0x4ff   :  { %1878 = vsyncmov [#allocation4 + $0x83] }
 0x502   :  { %s1879_s4 = vpop.sfrf %1878 }
 0x503   :  { %p2990_p7 = scmp.ne.s32.totalorder %s1879_s4, 0 }
 0x505   :  { %1883 = shalt.err (%p2990_p7)  }
 0x506   :  { %1885 = vsyncmov [#allocation4 + $0x84] }
 0x509   :  { %s1886_s5 = vpop.sfrf %1885 }
 0x50a   :  { %p2991_p8 = scmp.ne.s32.totalorder %s1886_s5, 0 }
 0x50c   :  { %1890 = shalt.err (%p2991_p8)  }
 0x50d   :  { %1892 = vsyncmov [#allocation4 + $0x85] }
 0x510   :  { %s1893_s6 = vpop.sfrf %1892 }
 0x511   :  { %p2992_p9 = scmp.ne.s32.totalorder %s1893_s6, 0 }
 0x513   :  { %1897 = shalt.err (%p2992_p9)  }
 0x514   :  { %1899 = vsyncmov [#allocation4 + $0x86] }
 0x517   :  { %s1900_s1 = vpop.sfrf %1899 }
 0x518   :  { %p2993_p10 = scmp.ne.s32.totalorder %s1900_s1, 0 }
 0x51a   :  { %1904 = shalt.err (%p2993_p10)  }
 0x51b   :  { %1906 = vsyncmov [#allocation4 + $0x87] }
 0x51e   :  { %s1907_s30 = vpop.sfrf %1906 }
 0x51f   :  { %p2994_p11 = scmp.ne.s32.totalorder %s1907_s30, 0 }
 0x521   :  { %1911 = shalt.err (%p2994_p11)  }
 0x522   :  { %1913 = vsyncmov [#allocation4 + $0x88] }
 0x525   :  { %s1914_s7 = vpop.sfrf %1913 }
 0x526   :  { %p2995_p12 = scmp.ne.s32.totalorder %s1914_s7, 0 }
 0x528   :  { %1918 = shalt.err (%p2995_p12)  }
 0x529   :  { %1920 = vsyncmov [#allocation4 + $0x89] }
 0x52c   :  { %s1921_s14 = vpop.sfrf %1920 }
 0x52d   :  { %p2996_p13 = scmp.ne.s32.totalorder %s1921_s14, 0 }
 0x52f   :  { %1925 = shalt.err (%p2996_p13)  }
 0x530   :  { %1927 = vsyncmov [#allocation4 + $0x8a] }
 0x533   :  { %s1928_s19 = vpop.sfrf %1927 }
 0x534   :  { %p2997_p0 = scmp.ne.s32.totalorder %s1928_s19, 0 }
 0x536   :  { %1932 = shalt.err (%p2997_p0)  }
 0x537   :  { %1934 = vsyncmov [#allocation4 + $0x8b] }
 0x53a   :  { %s1935_s23 = vpop.sfrf %1934 }
 0x53b   :  { %p2998_p3 = scmp.ne.s32.totalorder %s1935_s23, 0 }
 0x53d   :  { %1939 = shalt.err (%p2998_p3)  }
 0x53e   :  { %1941 = vsyncmov [#allocation4 + $0x8c] }
 0x541   :  { %s1942_s27 = vpop.sfrf %1941 }
 0x542   :  { %p2999_p1 = scmp.ne.s32.totalorder %s1942_s27, 0 }
 0x544   :  { %1946 = shalt.err (%p2999_p1)  }
 0x545   :  { %1948 = vsyncmov [#allocation4 + $0x8d] }
 0x548   :  { %s1949_s28 = vpop.sfrf %1948 }
 0x549   :  { %p3000_p2 = scmp.ne.s32.totalorder %s1949_s28, 0 }
 0x54b   :  { %1953 = shalt.err (%p3000_p2)  }
 0x54c   :  { %1955 = vsyncmov [#allocation4 + $0x8e] }
 0x54f   :  { %s1956_s0 = vpop.sfrf %1955 }
 0x550   :  { %p3001_p4 = scmp.ne.s32.totalorder %s1956_s0, 0 }
 0x552   :  { %1960 = shalt.err (%p3001_p4)  }
 0x553   :  { %1962 = vsyncmov [#allocation4 + $0x8f] }
 0x556   :  { %s1963_s17 = vpop.sfrf %1962 }
 0x557   :  { %p3002_p5 = scmp.ne.s32.totalorder %s1963_s17, 0 }
 0x559   :  { %1967 = shalt.err (%p3002_p5)  }
 0x55a   :  { %1969 = vsyncmov [#allocation4 + $0x90] }
 0x55d   :  { %s1970_s20 = vpop.sfrf %1969 }
 0x55e   :  { %p3003_p6 = scmp.ne.s32.totalorder %s1970_s20, 0 }
 0x560   :  { %1974 = shalt.err (%p3003_p6)  }
 0x561   :  { %1976 = vsyncmov [#allocation4 + $0x91] }
 0x564   :  { %s1977_s25 = vpop.sfrf %1976 }
 0x565   :  { %p3004_p7 = scmp.ne.s32.totalorder %s1977_s25, 0 }
 0x567   :  { %1981 = shalt.err (%p3004_p7)  }
 0x568   :  { %1983 = vsyncmov [#allocation4 + $0x92] }
 0x56b   :  { %s1984_s26 = vpop.sfrf %1983 }
 0x56c   :  { %p3005_p8 = scmp.ne.s32.totalorder %s1984_s26, 0 }
 0x56e   :  { %1988 = shalt.err (%p3005_p8)  }
 0x56f   :  { %1990 = vsyncmov [#allocation4 + $0x93] }
 0x572   :  { %s1991_s29 = vpop.sfrf %1990 }
 0x573   :  { %p3006_p9 = scmp.ne.s32.totalorder %s1991_s29, 0 }
 0x575   :  { %1995 = shalt.err (%p3006_p9)  }
 0x576   :  { %1997 = vsyncmov [#allocation4 + $0x94] }
 0x579   :  { %s1998_s10 = vpop.sfrf %1997 }
 0x57a   :  { %p3007_p10 = scmp.ne.s32.totalorder %s1998_s10, 0 }
 0x57c   :  { %2002 = shalt.err (%p3007_p10)  }
 0x57d   :  { %2004 = vsyncmov [#allocation4 + $0x95] }
 0x580   :  { %s2005_s12 = vpop.sfrf %2004 }
 0x581   :  { %p3008_p11 = scmp.ne.s32.totalorder %s2005_s12, 0 }
 0x583   :  { %2009 = shalt.err (%p3008_p11)  }
 0x584   :  { %2011 = vsyncmov [#allocation4 + $0x96] }
 0x587   :  { %s2012_s13 = vpop.sfrf %2011 }
 0x588   :  { %p3009_p12 = scmp.ne.s32.totalorder %s2012_s13, 0 }
 0x58a   :  { %2016 = shalt.err (%p3009_p12)  }
 0x58b   :  { %2018 = vsyncmov [#allocation4 + $0x97] }
 0x58e   :  { %s2019_s18 = vpop.sfrf %2018 }
 0x58f   :  { %p3010_p13 = scmp.ne.s32.totalorder %s2019_s18, 0 }
 0x591   :  { %2023 = shalt.err (%p3010_p13)  }
 0x592   :  { %2025 = vsyncmov [#allocation4 + $0x98] }
 0x595   :  { %s2026_s24 = vpop.sfrf %2025 }
 0x596   :  { %p3011_p0 = scmp.ne.s32.totalorder %s2026_s24, 0 }
 0x598   :  { %2030 = shalt.err (%p3011_p0)  }
 0x599   :  { %2032 = vsyncmov [#allocation4 + $0x99] }
 0x59c   :  { %s2033_s22 = vpop.sfrf %2032 }
 0x59d   :  { %p3012_p3 = scmp.ne.s32.totalorder %s2033_s22, 0 }
 0x59f   :  { %2037 = shalt.err (%p3012_p3)  }
 0x5a0   :  { %2039 = vsyncmov [#allocation4 + $0x9a] }
 0x5a3   :  { %s2040_s9 = vpop.sfrf %2039 }
 0x5a4   :  { %p3013_p1 = scmp.ne.s32.totalorder %s2040_s9, 0 }
 0x5a6   :  { %2044 = shalt.err (%p3013_p1)  }
 0x5a7   :  { %2046 = vsyncmov [#allocation4 + $0x9b] }
 0x5aa   :  { %s2047_s8 = vpop.sfrf %2046 }
 0x5ab   :  { %p3014_p2 = scmp.ne.s32.totalorder %s2047_s8, 0 }
 0x5ad   :  { %2051 = shalt.err (%p3014_p2)  }
 0x5ae   :  { %2053 = vsyncmov [#allocation4 + $0x9c] }
 0x5b1   :  { %s2054_s15 = vpop.sfrf %2053 }
 0x5b2   :  { %p3015_p4 = scmp.ne.s32.totalorder %s2054_s15, 0 }
 0x5b4   :  { %2058 = shalt.err (%p3015_p4)  }
 0x5b5   :  { %2060 = vsyncmov [#allocation4 + $0x9d] }
 0x5b8   :  { %s2061_s16 = vpop.sfrf %2060 }
 0x5b9   :  { %p3016_p5 = scmp.ne.s32.totalorder %s2061_s16, 0 }
 0x5bb   :  { %2065 = shalt.err (%p3016_p5)  }
 0x5bc   :  { %2067 = vsyncmov [#allocation4 + $0x9e] }
 0x5bf   :  { %s2068_s21 = vpop.sfrf %2067 }
 0x5c0   :  { %p3017_p6 = scmp.ne.s32.totalorder %s2068_s21, 0 }
 0x5c2   :  { %2072 = shalt.err (%p3017_p6)  }
 0x5c3   :  { %2074 = vsyncmov [#allocation4 + $0x9f] }
 0x5c6   :  { %s2075_s11 = vpop.sfrf %2074 }
 0x5c7   :  { %p3018_p7 = scmp.ne.s32.totalorder %s2075_s11, 0 }
 0x5c9   :  { %2079 = shalt.err (%p3018_p7)  }
 0x5ca   :  { %2081 = vsyncmov [#allocation4 + $0xa0] }
 0x5cd   :  { %s2082_s2 = vpop.sfrf %2081 }
 0x5ce   :  { %p3019_p8 = scmp.ne.s32.totalorder %s2082_s2, 0 }
 0x5d0   :  { %2086 = shalt.err (%p3019_p8)  }
 0x5d1   :  { %2088 = vsyncmov [#allocation4 + $0xa1] }
 0x5d4   :  { %s2089_s3 = vpop.sfrf %2088 }
 0x5d5   :  { %p3020_p9 = scmp.ne.s32.totalorder %s2089_s3, 0 }
 0x5d7   :  { %2093 = shalt.err (%p3020_p9)  }
 0x5d8   :  { %2095 = vsyncmov [#allocation4 + $0xa2] }
 0x5db   :  { %s2096_s4 = vpop.sfrf %2095 }
 0x5dc   :  { %p3021_p10 = scmp.ne.s32.totalorder %s2096_s4, 0 }
 0x5de   :  { %2100 = shalt.err (%p3021_p10)  }
 0x5df   :  { %2102 = vsyncmov [#allocation4 + $0xa3] }
 0x5e2   :  { %s2103_s5 = vpop.sfrf %2102 }
 0x5e3   :  { %p3022_p11 = scmp.ne.s32.totalorder %s2103_s5, 0 }
 0x5e5   :  { %2107 = shalt.err (%p3022_p11)  }
 0x5e6   :  { %2109 = vsyncmov [#allocation4 + $0xa4] }
 0x5e9   :  { %s2110_s6 = vpop.sfrf %2109 }
 0x5ea   :  { %p3023_p12 = scmp.ne.s32.totalorder %s2110_s6, 0 }
 0x5ec   :  { %2114 = shalt.err (%p3023_p12)  }
 0x5ed   :  { %2116 = vsyncmov [#allocation4 + $0xa5] }
 0x5f0   :  { %s2117_s1 = vpop.sfrf %2116 }
 0x5f1   :  { %p3024_p13 = scmp.ne.s32.totalorder %s2117_s1, 0 }
 0x5f3   :  { %2121 = shalt.err (%p3024_p13)  }
 0x5f4   :  { %2123 = vsyncmov [#allocation4 + $0xa6] }
 0x5f7   :  { %s2124_s30 = vpop.sfrf %2123 }
 0x5f8   :  { %p3025_p0 = scmp.ne.s32.totalorder %s2124_s30, 0 }
 0x5fa   :  { %2128 = shalt.err (%p3025_p0)  }
 0x5fb   :  { %2130 = vsyncmov [#allocation4 + $0xa7] }
 0x5fe   :  { %s2131_s7 = vpop.sfrf %2130 }
 0x5ff   :  { %p3026_p3 = scmp.ne.s32.totalorder %s2131_s7, 0 }
 0x601   :  { %2135 = shalt.err (%p3026_p3)  }
 0x602   :  { %2137 = vsyncmov [#allocation4 + $0xa8] }
 0x605   :  { %s2138_s14 = vpop.sfrf %2137 }
 0x606   :  { %p3027_p1 = scmp.ne.s32.totalorder %s2138_s14, 0 }
 0x608   :  { %2142 = shalt.err (%p3027_p1)  }
 0x609   :  { %2144 = vsyncmov [#allocation4 + $0xa9] }
 0x60c   :  { %s2145_s19 = vpop.sfrf %2144 }
 0x60d   :  { %p3028_p2 = scmp.ne.s32.totalorder %s2145_s19, 0 }
 0x60f   :  { %2149 = shalt.err (%p3028_p2)  }
 0x610   :  { %2151 = vsyncmov [#allocation4 + $0xaa] }
 0x613   :  { %s2152_s23 = vpop.sfrf %2151 }
 0x614   :  { %p3029_p4 = scmp.ne.s32.totalorder %s2152_s23, 0 }
 0x616   :  { %2156 = shalt.err (%p3029_p4)  }
 0x617   :  { %2158 = vsyncmov [#allocation4 + $0xab] }
 0x61a   :  { %s2159_s27 = vpop.sfrf %2158 }
 0x61b   :  { %p3030_p5 = scmp.ne.s32.totalorder %s2159_s27, 0 }
 0x61d   :  { %2163 = shalt.err (%p3030_p5)  }
 0x61e   :  { %2165 = vsyncmov [#allocation4 + $0xac] }
 0x621   :  { %s2166_s28 = vpop.sfrf %2165 }
 0x622   :  { %p3031_p6 = scmp.ne.s32.totalorder %s2166_s28, 0 }
 0x624   :  { %2170 = shalt.err (%p3031_p6)  }
 0x625   :  { %2172 = vsyncmov [#allocation4 + $0xad] }
 0x628   :  { %s2173_s0 = vpop.sfrf %2172 }
 0x629   :  { %p3032_p7 = scmp.ne.s32.totalorder %s2173_s0, 0 }
 0x62b   :  { %2177 = shalt.err (%p3032_p7)  }
 0x62c   :  { %2179 = vsyncmov [#allocation4 + $0xae] }
 0x62f   :  { %s2180_s17 = vpop.sfrf %2179 }
 0x630   :  { %p3033_p8 = scmp.ne.s32.totalorder %s2180_s17, 0 }
 0x632   :  { %2184 = shalt.err (%p3033_p8)  }
 0x633   :  { %2186 = vsyncmov [#allocation4 + $0xaf] }
 0x636   :  { %s2187_s20 = vpop.sfrf %2186 }
 0x637   :  { %p3034_p9 = scmp.ne.s32.totalorder %s2187_s20, 0 }
 0x639   :  { %2191 = shalt.err (%p3034_p9)  }
 0x63a   :  { %2193 = vsyncmov [#allocation4 + $0xb0] }
 0x63d   :  { %s2194_s25 = vpop.sfrf %2193 }
 0x63e   :  { %p3035_p10 = scmp.ne.s32.totalorder %s2194_s25, 0 }
 0x640   :  { %2198 = shalt.err (%p3035_p10)  }
 0x641   :  { %2200 = vsyncmov [#allocation4 + $0xb1] }
 0x644   :  { %s2201_s26 = vpop.sfrf %2200 }
 0x645   :  { %p3036_p11 = scmp.ne.s32.totalorder %s2201_s26, 0 }
 0x647   :  { %2205 = shalt.err (%p3036_p11)  }
 0x648   :  { %2207 = vsyncmov [#allocation4 + $0xb2] }
 0x64b   :  { %s2208_s29 = vpop.sfrf %2207 }
 0x64c   :  { %p3037_p12 = scmp.ne.s32.totalorder %s2208_s29, 0 }
 0x64e   :  { %2212 = shalt.err (%p3037_p12)  }
 0x64f   :  { %2214 = vsyncmov [#allocation4 + $0xb3] }
 0x652   :  { %s2215_s10 = vpop.sfrf %2214 }
 0x653   :  { %p3038_p13 = scmp.ne.s32.totalorder %s2215_s10, 0 }
 0x655   :  { %2219 = shalt.err (%p3038_p13)  }
 0x656   :  { %2221 = vsyncmov [#allocation4 + $0xb4] }
 0x659   :  { %s2222_s12 = vpop.sfrf %2221 }
 0x65a   :  { %p3039_p0 = scmp.ne.s32.totalorder %s2222_s12, 0 }
 0x65c   :  { %2226 = shalt.err (%p3039_p0)  }
 0x65d   :  { %2228 = vsyncmov [#allocation4 + $0xb5] }
 0x660   :  { %s2229_s13 = vpop.sfrf %2228 }
 0x661   :  { %p3040_p3 = scmp.ne.s32.totalorder %s2229_s13, 0 }
 0x663   :  { %2233 = shalt.err (%p3040_p3)  }
 0x664   :  { %2235 = vsyncmov [#allocation4 + $0xb6] }
 0x667   :  { %s2236_s18 = vpop.sfrf %2235 }
 0x668   :  { %p3041_p1 = scmp.ne.s32.totalorder %s2236_s18, 0 }
 0x66a   :  { %2240 = shalt.err (%p3041_p1)  }
 0x66b   :  { %2242 = vsyncmov [#allocation4 + $0xb7] }
 0x66e   :  { %s2243_s24 = vpop.sfrf %2242 }
 0x66f   :  { %p3042_p2 = scmp.ne.s32.totalorder %s2243_s24, 0 }
 0x671   :  { %2247 = shalt.err (%p3042_p2)  }
 0x672   :  { %2249 = vsyncmov [#allocation4 + $0xb8] }
 0x675   :  { %s2250_s22 = vpop.sfrf %2249 }
 0x676   :  { %p3043_p4 = scmp.ne.s32.totalorder %s2250_s22, 0 }
 0x678   :  { %2254 = shalt.err (%p3043_p4)  }
 0x679   :  { %2256 = vsyncmov [#allocation4 + $0xb9] }
 0x67c   :  { %s2257_s9 = vpop.sfrf %2256 }
 0x67d   :  { %p3044_p5 = scmp.ne.s32.totalorder %s2257_s9, 0 }
 0x67f   :  { %2261 = shalt.err (%p3044_p5)  }
 0x680   :  { %2263 = vsyncmov [#allocation4 + $0xba] }
 0x683   :  { %s2264_s8 = vpop.sfrf %2263 }
 0x684   :  { %p3045_p6 = scmp.ne.s32.totalorder %s2264_s8, 0 }
 0x686   :  { %2268 = shalt.err (%p3045_p6)  }
 0x687   :  { %2270 = vsyncmov [#allocation4 + $0xbb] }
 0x68a   :  { %s2271_s15 = vpop.sfrf %2270 }
 0x68b   :  { %p3046_p7 = scmp.ne.s32.totalorder %s2271_s15, 0 }
 0x68d   :  { %2275 = shalt.err (%p3046_p7)  }
 0x68e   :  { %2277 = vsyncmov [#allocation4 + $0xbc] }
 0x691   :  { %s2278_s16 = vpop.sfrf %2277 }
 0x692   :  { %p3047_p8 = scmp.ne.s32.totalorder %s2278_s16, 0 }
 0x694   :  { %2282 = shalt.err (%p3047_p8)  }
 0x695   :  { %2284 = vsyncmov [#allocation4 + $0xbd] }
 0x698   :  { %s2285_s21 = vpop.sfrf %2284 }
 0x699   :  { %p3048_p9 = scmp.ne.s32.totalorder %s2285_s21, 0 }
 0x69b   :  { %2289 = shalt.err (%p3048_p9)  }
 0x69c   :  { %2291 = vsyncmov [#allocation4 + $0xbe] }
 0x69f   :  { %s2292_s11 = vpop.sfrf %2291 }
 0x6a0   :  { %p3049_p10 = scmp.ne.s32.totalorder %s2292_s11, 0 }
 0x6a2   :  { %2296 = shalt.err (%p3049_p10)  }
 0x6a3   :  { %2298 = vsyncmov [#allocation4 + $0xbf] }
 0x6a6   :  { %s2299_s2 = vpop.sfrf %2298 }
 0x6a7   :  { %p3050_p11 = scmp.ne.s32.totalorder %s2299_s2, 0 }
 0x6a9   :  { %2303 = shalt.err (%p3050_p11)  }
 0x6aa   :  { %2305 = vsyncmov [#allocation4 + $0xc0] }
 0x6ad   :  { %s2306_s3 = vpop.sfrf %2305 }
 0x6ae   :  { %p3051_p12 = scmp.ne.s32.totalorder %s2306_s3, 0 }
 0x6b0   :  { %2310 = shalt.err (%p3051_p12)  }
 0x6b1   :  { %2312 = vsyncmov [#allocation4 + $0xc1] }
 0x6b4   :  { %s2313_s4 = vpop.sfrf %2312 }
 0x6b5   :  { %p3052_p13 = scmp.ne.s32.totalorder %s2313_s4, 0 }
 0x6b7   :  { %2317 = shalt.err (%p3052_p13)  }
 0x6b8   :  { %2319 = vsyncmov [#allocation4 + $0xc2] }
 0x6bb   :  { %s2320_s5 = vpop.sfrf %2319 }
 0x6bc   :  { %p3053_p0 = scmp.ne.s32.totalorder %s2320_s5, 0 }
 0x6be   :  { %2324 = shalt.err (%p3053_p0)  }
 0x6bf   :  { %2326 = vsyncmov [#allocation4 + $0xc3] }
 0x6c2   :  { %s2327_s6 = vpop.sfrf %2326 }
 0x6c3   :  { %p3054_p3 = scmp.ne.s32.totalorder %s2327_s6, 0 }
 0x6c5   :  { %2331 = shalt.err (%p3054_p3)  }
 0x6c6   :  { %2333 = vsyncmov [#allocation4 + $0xc4] }
 0x6c9   :  { %s2334_s1 = vpop.sfrf %2333 }
 0x6ca   :  { %p3055_p1 = scmp.ne.s32.totalorder %s2334_s1, 0 }
 0x6cc   :  { %2338 = shalt.err (%p3055_p1)  }
 0x6cd   :  { %2340 = vsyncmov [#allocation4 + $0xc5] }
 0x6d0   :  { %s2341_s30 = vpop.sfrf %2340 }
 0x6d1   :  { %p3056_p2 = scmp.ne.s32.totalorder %s2341_s30, 0 }
 0x6d3   :  { %2345 = shalt.err (%p3056_p2)  }
 0x6d4   :  { %2347 = vsyncmov [#allocation4 + $0xc6] }
 0x6d7   :  { %s2348_s7 = vpop.sfrf %2347 }
 0x6d8   :  { %p3057_p4 = scmp.ne.s32.totalorder %s2348_s7, 0 }
 0x6da   :  { %2352 = shalt.err (%p3057_p4)  }
 0x6db   :  { %2354 = vsyncmov [#allocation4 + $0xc7] }
 0x6de   :  { %s2355_s14 = vpop.sfrf %2354 }
 0x6df   :  { %p3058_p5 = scmp.ne.s32.totalorder %s2355_s14, 0 }
 0x6e1   :  { %2359 = shalt.err (%p3058_p5)  }
 0x6e2   :  { %2361 = vsyncmov [#allocation4 + $0xc8] }
 0x6e5   :  { %s2362_s19 = vpop.sfrf %2361 }
 0x6e6   :  { %p3059_p6 = scmp.ne.s32.totalorder %s2362_s19, 0 }
 0x6e8   :  { %2366 = shalt.err (%p3059_p6)  }
 0x6e9   :  { %2368 = vsyncmov [#allocation4 + $0xc9] }
 0x6ec   :  { %s2369_s23 = vpop.sfrf %2368 }
 0x6ed   :  { %p3060_p7 = scmp.ne.s32.totalorder %s2369_s23, 0 }
 0x6ef   :  { %2373 = shalt.err (%p3060_p7)  }
 0x6f0   :  { %2375 = vsyncmov [#allocation4 + $0xca] }
 0x6f3   :  { %s2376_s27 = vpop.sfrf %2375 }
 0x6f4   :  { %p3061_p8 = scmp.ne.s32.totalorder %s2376_s27, 0 }
 0x6f6   :  { %2380 = shalt.err (%p3061_p8)  }
 0x6f7   :  { %2382 = vsyncmov [#allocation4 + $0xcb] }
 0x6fa   :  { %s2383_s28 = vpop.sfrf %2382 }
 0x6fb   :  { %p3062_p9 = scmp.ne.s32.totalorder %s2383_s28, 0 }
 0x6fd   :  { %2387 = shalt.err (%p3062_p9)  }
 0x6fe   :  { %2389 = vsyncmov [#allocation4 + $0xcc] }
 0x701   :  { %s2390_s0 = vpop.sfrf %2389 }
 0x702   :  { %p3063_p10 = scmp.ne.s32.totalorder %s2390_s0, 0 }
 0x704   :  { %2394 = shalt.err (%p3063_p10)  }
 0x705   :  { %2396 = vsyncmov [#allocation4 + $0xcd] }
 0x708   :  { %s2397_s17 = vpop.sfrf %2396 }
 0x709   :  { %p3064_p11 = scmp.ne.s32.totalorder %s2397_s17, 0 }
 0x70b   :  { %2401 = shalt.err (%p3064_p11)  }
 0x70c   :  { %2403 = vsyncmov [#allocation4 + $0xce] }
 0x70f   :  { %s2404_s20 = vpop.sfrf %2403 }
 0x710   :  { %p3065_p12 = scmp.ne.s32.totalorder %s2404_s20, 0 }
 0x712   :  { %2408 = shalt.err (%p3065_p12)  }
 0x713   :  { %2410 = vsyncmov [#allocation4 + $0xcf] }
 0x716   :  { %s2411_s25 = vpop.sfrf %2410 }
 0x717   :  { %p3066_p13 = scmp.ne.s32.totalorder %s2411_s25, 0 }
 0x719   :  { %2415 = shalt.err (%p3066_p13)  }
 0x71a   :  { %2417 = vsyncmov [#allocation4 + $0xd0] }
 0x71d   :  { %s2418_s26 = vpop.sfrf %2417 }
 0x71e   :  { %p3067_p0 = scmp.ne.s32.totalorder %s2418_s26, 0 }
 0x720   :  { %2422 = shalt.err (%p3067_p0)  }
 0x721   :  { %2424 = vsyncmov [#allocation4 + $0xd1] }
 0x724   :  { %s2425_s29 = vpop.sfrf %2424 }
 0x725   :  { %p3068_p3 = scmp.ne.s32.totalorder %s2425_s29, 0 }
 0x727   :  { %2429 = shalt.err (%p3068_p3)  }
 0x728   :  { %2431 = vsyncmov [#allocation4 + $0xd2] }
 0x72b   :  { %s2432_s10 = vpop.sfrf %2431 }
 0x72c   :  { %p3069_p1 = scmp.ne.s32.totalorder %s2432_s10, 0 }
 0x72e   :  { %2436 = shalt.err (%p3069_p1)  }
 0x72f   :  { %2438 = vsyncmov [#allocation4 + $0xd3] }
 0x732   :  { %s2439_s12 = vpop.sfrf %2438 }
 0x733   :  { %p3070_p2 = scmp.ne.s32.totalorder %s2439_s12, 0 }
 0x735   :  { %2443 = shalt.err (%p3070_p2)  }
 0x736   :  { %2445 = vsyncmov [#allocation4 + $0xd4] }
 0x739   :  { %s2446_s13 = vpop.sfrf %2445 }
 0x73a   :  { %p3071_p4 = scmp.ne.s32.totalorder %s2446_s13, 0 }
 0x73c   :  { %2450 = shalt.err (%p3071_p4)  }
 0x73d   :  { %2452 = vsyncmov [#allocation4 + $0xd5] }
 0x740   :  { %s2453_s18 = vpop.sfrf %2452 }
 0x741   :  { %p3072_p5 = scmp.ne.s32.totalorder %s2453_s18, 0 }
 0x743   :  { %2457 = shalt.err (%p3072_p5)  }
 0x744   :  { %2459 = vsyncmov [#allocation4 + $0xd6] }
 0x747   :  { %s2460_s24 = vpop.sfrf %2459 }
 0x748   :  { %p3073_p6 = scmp.ne.s32.totalorder %s2460_s24, 0 }
 0x74a   :  { %2464 = shalt.err (%p3073_p6)  }
 0x74b   :  { %2466 = vsyncmov [#allocation4 + $0xd7] }
 0x74e   :  { %s2467_s22 = vpop.sfrf %2466 }
 0x74f   :  { %p3074_p7 = scmp.ne.s32.totalorder %s2467_s22, 0 }
 0x751   :  { %2471 = shalt.err (%p3074_p7)  }
 0x752   :  { %2473 = vsyncmov [#allocation4 + $0xd8] }
 0x755   :  { %s2474_s9 = vpop.sfrf %2473 }
 0x756   :  { %p3075_p8 = scmp.ne.s32.totalorder %s2474_s9, 0 }
 0x758   :  { %2478 = shalt.err (%p3075_p8)  }
 0x759   :  { %2480 = vsyncmov [#allocation4 + $0xd9] }
 0x75c   :  { %s2481_s8 = vpop.sfrf %2480 }
 0x75d   :  { %p3076_p9 = scmp.ne.s32.totalorder %s2481_s8, 0 }
 0x75f   :  { %2485 = shalt.err (%p3076_p9)  }
 0x760   :  { %2487 = vsyncmov [#allocation4 + $0xda] }
 0x763   :  { %s2488_s15 = vpop.sfrf %2487 }
 0x764   :  { %p3077_p10 = scmp.ne.s32.totalorder %s2488_s15, 0 }
 0x766   :  { %2492 = shalt.err (%p3077_p10)  }
 0x767   :  { %2494 = vsyncmov [#allocation4 + $0xdb] }
 0x76a   :  { %s2495_s16 = vpop.sfrf %2494 }
 0x76b   :  { %p3078_p11 = scmp.ne.s32.totalorder %s2495_s16, 0 }
 0x76d   :  { %2499 = shalt.err (%p3078_p11)  }
 0x76e   :  { %2501 = vsyncmov [#allocation4 + $0xdc] }
 0x771   :  { %s2502_s21 = vpop.sfrf %2501 }
 0x772   :  { %p3079_p12 = scmp.ne.s32.totalorder %s2502_s21, 0 }
 0x774   :  { %2506 = shalt.err (%p3079_p12)  }
 0x775   :  { %2508 = vsyncmov [#allocation4 + $0xdd] }
 0x778   :  { %s2509_s11 = vpop.sfrf %2508 }
 0x779   :  { %p3080_p13 = scmp.ne.s32.totalorder %s2509_s11, 0 }
 0x77b   :  { %2513 = shalt.err (%p3080_p13)  }
 0x77c   :  { %2515 = vsyncmov [#allocation4 + $0xde] }
 0x77f   :  { %s2516_s2 = vpop.sfrf %2515 }
 0x780   :  { %p3081_p0 = scmp.ne.s32.totalorder %s2516_s2, 0 }
 0x782   :  { %2520 = shalt.err (%p3081_p0)  }
 0x783   :  { %2522 = vsyncmov [#allocation4 + $0xdf] }
 0x786   :  { %s2523_s3 = vpop.sfrf %2522 }
 0x787   :  { %p3082_p3 = scmp.ne.s32.totalorder %s2523_s3, 0 }
 0x789   :  { %2527 = shalt.err (%p3082_p3)  }
 0x78a   :  { %2529 = vsyncmov [#allocation4 + $0xe0] }
 0x78d   :  { %s2530_s4 = vpop.sfrf %2529 }
 0x78e   :  { %p3083_p1 = scmp.ne.s32.totalorder %s2530_s4, 0 }
 0x790   :  { %2534 = shalt.err (%p3083_p1)  }
 0x791   :  { %2536 = vsyncmov [#allocation4 + $0xe1] }
 0x794   :  { %s2537_s5 = vpop.sfrf %2536 }
 0x795   :  { %p3084_p2 = scmp.ne.s32.totalorder %s2537_s5, 0 }
 0x797   :  { %2541 = shalt.err (%p3084_p2)  }
 0x798   :  { %2543 = vsyncmov [#allocation4 + $0xe2] }
 0x79b   :  { %s2544_s6 = vpop.sfrf %2543 }
 0x79c   :  { %p3085_p4 = scmp.ne.s32.totalorder %s2544_s6, 0 }
 0x79e   :  { %2548 = shalt.err (%p3085_p4)  }
 0x79f   :  { %2550 = vsyncmov [#allocation4 + $0xe3] }
 0x7a2   :  { %s2551_s1 = vpop.sfrf %2550 }
 0x7a3   :  { %p3086_p5 = scmp.ne.s32.totalorder %s2551_s1, 0 }
 0x7a5   :  { %2555 = shalt.err (%p3086_p5)  }
 0x7a6   :  { %2557 = vsyncmov [#allocation4 + $0xe4] }
 0x7a9   :  { %s2558_s30 = vpop.sfrf %2557 }
 0x7aa   :  { %p3087_p6 = scmp.ne.s32.totalorder %s2558_s30, 0 }
 0x7ac   :  { %2562 = shalt.err (%p3087_p6)  }
 0x7ad   :  { %2564 = vsyncmov [#allocation4 + $0xe5] }
 0x7b0   :  { %s2565_s7 = vpop.sfrf %2564 }
 0x7b1   :  { %p3088_p7 = scmp.ne.s32.totalorder %s2565_s7, 0 }
 0x7b3   :  { %2569 = shalt.err (%p3088_p7)  }
 0x7b4   :  { %2571 = vsyncmov [#allocation4 + $0xe6] }
 0x7b7   :  { %s2572_s14 = vpop.sfrf %2571 }
 0x7b8   :  { %p3089_p8 = scmp.ne.s32.totalorder %s2572_s14, 0 }
 0x7ba   :  { %2576 = shalt.err (%p3089_p8)  }
 0x7bb   :  { %2578 = vsyncmov [#allocation4 + $0xe7] }
 0x7be   :  { %s2579_s19 = vpop.sfrf %2578 }
 0x7bf   :  { %p3090_p9 = scmp.ne.s32.totalorder %s2579_s19, 0 }
 0x7c1   :  { %2583 = shalt.err (%p3090_p9)  }
 0x7c2   :  { %2585 = vsyncmov [#allocation4 + $0xe8] }
 0x7c5   :  { %s2586_s23 = vpop.sfrf %2585 }
 0x7c6   :  { %p3091_p10 = scmp.ne.s32.totalorder %s2586_s23, 0 }
 0x7c8   :  { %2590 = shalt.err (%p3091_p10)  }
 0x7c9   :  { %2592 = vsyncmov [#allocation4 + $0xe9] }
 0x7cc   :  { %s2593_s27 = vpop.sfrf %2592 }
 0x7cd   :  { %p3092_p11 = scmp.ne.s32.totalorder %s2593_s27, 0 }
 0x7cf   :  { %2597 = shalt.err (%p3092_p11)  }
 0x7d0   :  { %2599 = vsyncmov [#allocation4 + $0xea] }
 0x7d3   :  { %s2600_s28 = vpop.sfrf %2599 }
 0x7d4   :  { %p3093_p12 = scmp.ne.s32.totalorder %s2600_s28, 0 }
 0x7d6   :  { %2604 = shalt.err (%p3093_p12)  }
 0x7d7   :  { %2606 = vsyncmov [#allocation4 + $0xeb] }
 0x7da   :  { %s2607_s0 = vpop.sfrf %2606 }
 0x7db   :  { %p3094_p13 = scmp.ne.s32.totalorder %s2607_s0, 0 }
 0x7dd   :  { %2611 = shalt.err (%p3094_p13)  }
 0x7de   :  { %2613 = vsyncmov [#allocation4 + $0xec] }
 0x7e1   :  { %s2614_s17 = vpop.sfrf %2613 }
 0x7e2   :  { %p3095_p0 = scmp.ne.s32.totalorder %s2614_s17, 0 }
 0x7e4   :  { %2618 = shalt.err (%p3095_p0)  }
 0x7e5   :  { %2620 = vsyncmov [#allocation4 + $0xed] }
 0x7e8   :  { %s2621_s20 = vpop.sfrf %2620 }
 0x7e9   :  { %p3096_p3 = scmp.ne.s32.totalorder %s2621_s20, 0 }
 0x7eb   :  { %2625 = shalt.err (%p3096_p3)  }
 0x7ec   :  { %2627 = vsyncmov [#allocation4 + $0xee] }
 0x7ef   :  { %s2628_s25 = vpop.sfrf %2627 }
 0x7f0   :  { %p3097_p1 = scmp.ne.s32.totalorder %s2628_s25, 0 }
 0x7f2   :  { %2632 = shalt.err (%p3097_p1)  }
 0x7f3   :  { %2634 = vsyncmov [#allocation4 + $0xef] }
 0x7f6   :  { %s2635_s26 = vpop.sfrf %2634 }
 0x7f7   :  { %p3098_p2 = scmp.ne.s32.totalorder %s2635_s26, 0 }
 0x7f9   :  { %2639 = shalt.err (%p3098_p2)  }
 0x7fa   :  { %2641 = vsyncmov [#allocation4 + $0xf0] }
 0x7fd   :  { %s2642_s29 = vpop.sfrf %2641 }
 0x7fe   :  { %p3099_p4 = scmp.ne.s32.totalorder %s2642_s29, 0 }
 0x800   :  { %2646 = shalt.err (%p3099_p4)  }
 0x801   :  { %2648 = vsyncmov [#allocation4 + $0xf1] }
 0x804   :  { %s2649_s10 = vpop.sfrf %2648 }
 0x805   :  { %p3100_p5 = scmp.ne.s32.totalorder %s2649_s10, 0 }
 0x807   :  { %2653 = shalt.err (%p3100_p5)  }
 0x808   :  { %2655 = vsyncmov [#allocation4 + $0xf2] }
 0x80b   :  { %s2656_s12 = vpop.sfrf %2655 }
 0x80c   :  { %p3101_p6 = scmp.ne.s32.totalorder %s2656_s12, 0 }
 0x80e   :  { %2660 = shalt.err (%p3101_p6)  }
 0x80f   :  { %2662 = vsyncmov [#allocation4 + $0xf3] }
 0x812   :  { %s2663_s13 = vpop.sfrf %2662 }
 0x813   :  { %p3102_p7 = scmp.ne.s32.totalorder %s2663_s13, 0 }
 0x815   :  { %2667 = shalt.err (%p3102_p7)  }
 0x816   :  { %2669 = vsyncmov [#allocation4 + $0xf4] }
 0x819   :  { %s2670_s18 = vpop.sfrf %2669 }
 0x81a   :  { %p3103_p8 = scmp.ne.s32.totalorder %s2670_s18, 0 }
 0x81c   :  { %2674 = shalt.err (%p3103_p8)  }
 0x81d   :  { %2676 = vsyncmov [#allocation4 + $0xf5] }
 0x820   :  { %s2677_s24 = vpop.sfrf %2676 }
 0x821   :  { %p3104_p9 = scmp.ne.s32.totalorder %s2677_s24, 0 }
 0x823   :  { %2681 = shalt.err (%p3104_p9)  }
 0x824   :  { %2683 = vsyncmov [#allocation4 + $0xf6] }
 0x827   :  { %s2684_s22 = vpop.sfrf %2683 }
 0x828   :  { %p3105_p10 = scmp.ne.s32.totalorder %s2684_s22, 0 }
 0x82a   :  { %2688 = shalt.err (%p3105_p10)  }
 0x82b   :  { %2690 = vsyncmov [#allocation4 + $0xf7] }
 0x82e   :  { %s2691_s9 = vpop.sfrf %2690 }
 0x82f   :  { %p3106_p11 = scmp.ne.s32.totalorder %s2691_s9, 0 }
 0x831   :  { %2695 = shalt.err (%p3106_p11)  }
 0x832   :  { %2697 = vsyncmov [#allocation4 + $0xf8] }
 0x835   :  { %s2698_s8 = vpop.sfrf %2697 }
 0x836   :  { %p3107_p12 = scmp.ne.s32.totalorder %s2698_s8, 0 }
 0x838   :  { %2702 = shalt.err (%p3107_p12)  }
 0x839   :  { %2704 = vsyncmov [#allocation4 + $0xf9] }
 0x83c   :  { %s2705_s15 = vpop.sfrf %2704 }
 0x83d   :  { %p3108_p13 = scmp.ne.s32.totalorder %s2705_s15, 0 }
 0x83f   :  { %2709 = shalt.err (%p3108_p13)  }
 0x840   :  { %2711 = vsyncmov [#allocation4 + $0xfa] }
 0x843   :  { %s2712_s16 = vpop.sfrf %2711 }
 0x844   :  { %p3109_p0 = scmp.ne.s32.totalorder %s2712_s16, 0 }
 0x846   :  { %2716 = shalt.err (%p3109_p0)  }
 0x847   :  { %2718 = vsyncmov [#allocation4 + $0xfb] }
 0x84a   :  { %s2719_s21 = vpop.sfrf %2718 }
 0x84b   :  { %p3110_p3 = scmp.ne.s32.totalorder %s2719_s21, 0 }
 0x84d   :  { %2723 = shalt.err (%p3110_p3)  }
 0x84e   :  { %2725 = vsyncmov [#allocation4 + $0xfc] }
 0x851   :  { %s2726_s11 = vpop.sfrf %2725 }
 0x852   :  { %p3111_p1 = scmp.ne.s32.totalorder %s2726_s11, 0 }
 0x854   :  { %2730 = shalt.err (%p3111_p1)  }
 0x855   :  { %2732 = vsyncmov [#allocation4 + $0xfd] }
 0x858   :  { %s2733_s2 = vpop.sfrf %2732 }
 0x859   :  { %p3112_p2 = scmp.ne.s32.totalorder %s2733_s2, 0 }
 0x85b   :  { %2737 = shalt.err (%p3112_p2)  }
 0x85c   :  { %2739 = vsyncmov [#allocation4 + $0xfe] }
 0x85f   :  { %s2740_s3 = vpop.sfrf %2739 }
 0x860   :  { %p3113_p4 = scmp.ne.s32.totalorder %s2740_s3, 0 }
 0x862   :  { %2744 = shalt.err (%p3113_p4)  }
 0x863   :  { %2746 = vsyncmov [#allocation4 + $0xff] }
 0x866   :  { %s2747_s4 = vpop.sfrf %2746 }
 0x867   :  { %p3114_p5 = scmp.ne.s32.totalorder %s2747_s4, 0 }
 0x869   :  { %2751 = shalt.err (%p3114_p5)  }

</bundles_post_ra>
